<compile_context>
chip_gen: v7x
topology: tpu7x:2x2x1
jax: 0.10.0
libtpu: 0.0.40
codegen_flags: <defaults>
</compile_context>

<pallas_src>
import functools

import jax
import jax.numpy as jnp
import numpy as np
from jax.experimental import pallas as pl
from jax.experimental.pallas import tpu as pltpu


def _round_up(x, m):
    return (x + m - 1) // m * m


# ---------------------------------------------------------------------------
# Fused BasicBlock kernel (one grid step == B images)
# ---------------------------------------------------------------------------
def _basic_block_kernel(*refs, B, P, stride, Ho, Wo, Cin, Cp, has_proj):
    if has_proj:
        (xph_ref, w1_ref, b1_ref, w2_ref, b2_ref, ws_ref, bs_ref,
         o_ref, y1p_ref) = refs
    else:
        (xph_ref, w1_ref, b1_ref, w2_ref, b2_ref,
         o_ref, y1p_ref) = refs

    f32 = jnp.float32
    bf16 = jnp.bfloat16
    M = Ho * Wo
    BM = B * M

    # ---- conv1: 3x3/stride s as ONE fused matmul (K = 9*Cin) -------------
    # In-VMEM im2col: 9 shifted windows per image, concatenated along the
    # channel axis.  Each tap is a contiguous static window of a stride-phase
    # plane of the padded input (no strided loads, no HBM im2col).
    cols1 = []
    for b in range(B):
        taps = []
        for dy in range(3):
            for dx in range(3):
                ph = (dy % stride) * stride + (dx % stride)
                oy, ox = dy // stride, dx // stride
                taps.append(xph_ref[b * P + ph, oy:oy + Ho, ox:ox + Wo, :])
        cols1.append(jnp.concatenate(taps, axis=-1).reshape(M, 9 * Cin))
    im1 = cols1[0] if B == 1 else jnp.concatenate(cols1, axis=0)  # (BM, 9*Cin)

    y1 = jnp.dot(im1, w1_ref[...], preferred_element_type=f32) + b1_ref[...]
    y1 = jnp.maximum(y1, 0.0).astype(bf16)                        # (BM, Cp)

    # ---- y1 halo lives in a bf16 VMEM scratch (never touches HBM) ---------
    # Only the 1-pixel border is zeroed; the interior is fully overwritten.
    zrow = jnp.zeros((1, Wo + 2, Cp), bf16)
    zcol = jnp.zeros((Ho, 1, Cp), bf16)
    for b in range(B):
        y1p_ref[b, 0:1, :, :] = zrow
        y1p_ref[b, Ho + 1:Ho + 2, :, :] = zrow
        y1p_ref[b, 1:Ho + 1, 0:1, :] = zcol
        y1p_ref[b, 1:Ho + 1, Wo + 1:Wo + 2, :] = zcol
        y1p_ref[b, 1:Ho + 1, 1:Wo + 1, :] = (
            y1[b * M:(b + 1) * M].reshape(Ho, Wo, Cp))

    # ---- conv2: 3x3/1 as ONE fused matmul (K = 9*Cp) ----------------------
    cols2 = []
    for b in range(B):
        taps = [y1p_ref[b, dy:dy + Ho, dx:dx + Wo, :]
                for dy in range(3) for dx in range(3)]
        cols2.append(jnp.concatenate(taps, axis=-1).reshape(M, 9 * Cp))
    im2 = cols2[0] if B == 1 else jnp.concatenate(cols2, axis=0)  # (BM, 9*Cp)

    y2 = jnp.dot(im2, w2_ref[...], preferred_element_type=f32) + b2_ref[...]

    # ---- shortcut ----------------------------------------------------------
    if has_proj:
        # x[s*i, s*j] == xpad[s*i+1, s*j+1] -> phase (1%s)*s+(1%s), offset 1//s:
        # the strided subsample comes for free from the phase decomposition.
        ph = (1 % stride) * stride + (1 % stride)
        o0 = 1 // stride
        xs = [xph_ref[b * P + ph, o0:o0 + Ho, o0:o0 + Wo, :].reshape(M, Cin)
              for b in range(B)]
        xs = xs[0] if B == 1 else jnp.concatenate(xs, axis=0)
        identity = (jnp.dot(xs, ws_ref[...], preferred_element_type=f32)
                    + bs_ref[...])
    else:
        # stride == 1 -> Identity shortcut (Cin == Cout); pad lanes to Cp.
        xs = [xph_ref[b, 1:Ho + 1, 1:Wo + 1, :].reshape(M, Cin)
              for b in range(B)]
        xs = xs[0] if B == 1 else jnp.concatenate(xs, axis=0)
        xs = xs.astype(f32)
        if Cp > Cin:
            xs = jnp.concatenate([xs, jnp.zeros((BM, Cp - Cin), f32)], axis=-1)
        identity = xs

    out = jnp.maximum(y2 + identity, 0.0).astype(o_ref.dtype)     # (BM, Cp)
    o_ref[...] = out.reshape(B, M, Cp)


# ---------------------------------------------------------------------------
# Parameter prep helpers
# ---------------------------------------------------------------------------
def fold_bn(gamma, beta, mean, var, eps=1e-5):
    scale = gamma / jnp.sqrt(var + eps)
    bias = beta - mean * scale
    return scale, bias


def _conv3x3_to_mat(w, cout_p, cin_p=None):
    # (O, I, 3, 3) -> zero-pad channels -> (9*I', O'); row index = tap*I' + i
    O, I, kh, kw = w.shape
    Ip = I if cin_p is None else cin_p
    w = jnp.pad(w, ((0, cout_p - O), (0, Ip - I), (0, 0), (0, 0)))
    return jnp.transpose(w, (2, 3, 1, 0)).reshape(kh * kw * Ip, cout_p)


def _choose_images_per_step(N, per_image_bytes, budget=20 << 20, max_b=8):
    # Largest divisor of N that fits the VMEM budget, preferring >= 2 grid
    # steps so both v7x TensorCores get work.
    cap = int(max(1, min(max_b, budget // max(per_image_bytes, 1))))
    best = 1
    for d in range(1, min(N, cap) + 1):
        if N % d == 0 and (N // d >= 2 or N == 1):
            best = d
    return best


# ---------------------------------------------------------------------------
# BasicBlock forward (Pallas)
# ---------------------------------------------------------------------------
def basic_block_forward(x_nchw, params, stride, out_dtype=jnp.bfloat16):
    assert stride in (1, 2), "CIFAR BasicBlock uses stride 1 or 2"
    x = jnp.transpose(x_nchw, (0, 2, 3, 1))                   # NHWC internally
    N, H, W, Cin = x.shape
    Cout = params["b1"].shape[0]
    assert H % stride == 0 and W % stride == 0
    if stride == 1:
        assert Cin == Cout, "identity shortcut requires Cin == Cout"
    Ho, Wo = H // stride, W // stride                          # pad=1, k=3
    M = Ho * Wo
    P = stride * stride
    has_proj = stride != 1
    Cp = _round_up(Cout, 128)                                  # lane-dense channels

    # bf16 operands for the MXU; f32 accumulation happens in-kernel.
    xb = x.astype(jnp.bfloat16)
    xp = jnp.pad(xb, ((0, 0), (1, 1), (1, 1), (0, 0)))
    # Stride-phase (space-to-depth) decomposition: total bytes == padded input.
    phases = [xp[:, py::stride, px::stride, :]
              for py in range(stride) for px in range(stride)]
    xph = jnp.stack(phases, axis=1)                            # (N, P, Hph, Wph, Cin)
    Hph, Wph = xph.shape[2], xph.shape[3]
    xph = xph.reshape(N * P, Hph, Wph, Cin)

    # BN scale folded into f32 weights; zero-pad channels to Cp, cast to bf16.
    w1 = _conv3x3_to_mat(params["w1_f"], Cp).astype(jnp.bfloat16)           # (9*Cin, Cp)
    w2 = _conv3x3_to_mat(params["w2_f"], Cp, cin_p=Cp).astype(jnp.bfloat16)  # (9*Cp, Cp)
    b1 = jnp.pad(params["b1"], (0, Cp - Cout)).reshape(1, Cp).astype(jnp.float32)
    b2 = jnp.pad(params["b2"], (0, Cp - Cout)).reshape(1, Cp).astype(jnp.float32)

    # VMEM-aware images-per-step (input/output double buffers, halo scratch,
    # conv2 im2col value, f32 temporaries).
    per_image = (2 * P * Hph * Wph * Cin * 2
                 + 2 * M * Cp * 2
                 + (Ho + 2) * (Wo + 2) * Cp * 2
                 + M * 9 * Cp * 2
                 + 3 * M * Cp * 4)
    B = _choose_images_per_step(N, per_image)

    args = [xph, w1, b1, w2, b2]
    in_specs = [
        pl.BlockSpec((B * P, Hph, Wph, Cin), lambda n: (n, 0, 0, 0)),
        pl.BlockSpec((9 * Cin, Cp), lambda n: (0, 0)),
        pl.BlockSpec((1, Cp), lambda n: (0, 0)),
        pl.BlockSpec((9 * Cp, Cp), lambda n: (0, 0)),
        pl.BlockSpec((1, Cp), lambda n: (0, 0)),
    ]
    flops = 2 * N * M * Cp * (9 * Cin + 9 * Cp)
    if has_proj:
        ws = jnp.pad(params["ws_f"][:, :, 0, 0], ((0, Cp - Cout), (0, 0)))
        ws = jnp.transpose(ws, (1, 0)).astype(jnp.bfloat16)                 # (Cin, Cp)
        bs = jnp.pad(params["bs"], (0, Cp - Cout)).reshape(1, Cp).astype(jnp.float32)
        args += [ws, bs]
        in_specs += [
            pl.BlockSpec((Cin, Cp), lambda n: (0, 0)),
            pl.BlockSpec((1, Cp), lambda n: (0, 0)),
        ]
        flops += 2 * N * M * Cin * Cp

    bytes_accessed = sum(int(np.prod(a.shape)) * a.dtype.itemsize for a in args)
    bytes_accessed += N * M * Cp * np.dtype(out_dtype).itemsize

    kernel = functools.partial(
        _basic_block_kernel, B=B, P=P, stride=stride, Ho=Ho, Wo=Wo,
        Cin=Cin, Cp=Cp, has_proj=has_proj)

    out = pl.pallas_call(
        kernel,
        out_shape=jax.ShapeDtypeStruct((N, M, Cp), out_dtype),
        grid=(N // B,),
        in_specs=in_specs,
        out_specs=pl.BlockSpec((B, M, Cp), lambda n: (n, 0, 0)),
        scratch_shapes=[pltpu.VMEM((B, Ho + 2, Wo + 2, Cp), jnp.bfloat16)],
        compiler_params=pltpu.CompilerParams(
            dimension_semantics=("parallel",),   # batch steps -> both v7x TCs
            vmem_limit_bytes=48 * 1024 * 1024),
        cost_estimate=pl.CostEstimate(
            flops=int(flops), transcendentals=0,
            bytes_accessed=int(bytes_accessed)),
    )(*args)

    # Slice off the channel padding BEFORE the NCHW transpose.
    out = out[:, :, :Cout].reshape(N, Ho, Wo, Cout)
    return jnp.transpose(out, (0, 3, 1, 2))                    # NCHW interface


# ---------------------------------------------------------------------------
# Pure-JAX reference (bf16-operand / f32-accumulate, f32 output)
# ---------------------------------------------------------------------------
def ref_forward(x_nchw, params, stride):
    f32 = jnp.float32

    def q(a):  # bf16 rounding, f32 math (same operand precision as the kernel)
        return a.astype(jnp.bfloat16).astype(f32)

    def conv(inp, w, s, pad):
        return jax.lax.conv_general_dilated(
            inp, q(w), (s, s), ((pad, pad), (pad, pad)),
            dimension_numbers=("NCHW", "OIHW", "NCHW"),
            preferred_element_type=f32,
            precision=jax.lax.Precision.HIGHEST)

    def add_bias(y, b):
        return y + b[None, :, None, None]

    x = q(x_nchw)
    if stride != 1:
        identity = add_bias(conv(x, params["ws_f"], stride, 0), params["bs"])
    else:
        identity = x
    y1 = jnp.maximum(add_bias(conv(x, params["w1_f"], stride, 1), params["b1"]), 0.0)
    y1 = q(y1)   # kernel feeds conv2 with bf16-rounded y1
    y2 = add_bias(conv(y1, params["w2_f"], 1, 1), params["b2"])
    return jnp.maximum(y2 + identity, 0.0)


# ---------------------------------------------------------------------------
def make_params(key, cin, cout):
    ks = jax.random.split(key, 6)

    def bn_params(k):
        ka, kb, kc, kd = jax.random.split(k, 4)
        gamma = 1.0 + 0.1 * jax.random.normal(ka, (cout,), jnp.float32)
        beta = 0.1 * jax.random.normal(kb, (cout,), jnp.float32)
        mean = 0.1 * jax.random.normal(kc, (cout,), jnp.float32)
        var = 1.0 + 0.1 * jnp.abs(jax.random.normal(kd, (cout,), jnp.float32))
        return fold_bn(gamma, beta, mean, var)

    w1 = 0.1 * jax.random.normal(ks[0], (cout, cin, 3, 3), jnp.float32)
    w2 = 0.1 * jax.random.normal(ks[1], (cout, cout, 3, 3), jnp.float32)
    ws = 0.1 * jax.random.normal(ks[2], (cout, cin, 1, 1), jnp.float32)
    s1, b1 = bn_params(ks[3])
    s2, b2 = bn_params(ks[4])
    ss, bs = bn_params(ks[5])

    # Fold BN scale into the conv weights (eval-mode BN == affine).
    return dict(
        w1_f=w1 * s1[:, None, None, None], b1=b1,
        w2_f=w2 * s2[:, None, None, None], b2=b2,
        ws_f=ws * ss[:, None, None, None], bs=bs,
    )


if __name__ == "__main__":
    key = jax.random.PRNGKey(0)
    k1, k2, k3, k4 = jax.random.split(key, 4)

    fwd = jax.jit(basic_block_forward, static_argnums=(2,))

    # Case 1: stride-2 block with 1x1-conv projection shortcut.
    batch, cin, cout, hw, stride = 2, 4, 8, 16, 2
    x = jax.random.normal(k1, (batch, cin, hw, hw), jnp.float32)   # NCHW input
    params = make_params(k2, cin, cout)
    out = jax.block_until_ready(fwd(x, params, stride))
    ref = jax.block_until_ready(ref_forward(x, params, stride))
    # Kernel output is bf16 (lane-dense, half HBM writeback) -> bf16 tolerance.
    np.testing.assert_allclose(np.asarray(out.astype(jnp.float32)),
                               np.asarray(ref), rtol=2e-2, atol=2e-2)
    assert out.shape == (batch, cout, hw // stride, hw // stride)

    # Case 2: stride-1 block with identity shortcut.
    batch, cio, hw = 2, 8, 8
    x = jax.random.normal(k3, (batch, cio, hw, hw), jnp.float32)
    params = make_params(k4, cio, cio)
    out = jax.block_until_ready(fwd(x, params, 1))
    ref = jax.block_until_ready(ref_forward(x, params, 1))
    np.testing.assert_allclose(np.asarray(out.astype(jnp.float32)),
                               np.asarray(ref), rtol=2e-2, atol=2e-2)
    assert out.shape == (batch, cio, hw, hw)

    print("KERNEL_OK")
</pallas_src>

<mosaic_0001>
module attributes {stable_mosaic.version = 11 : i64} {
  func.func @_basic_block_kernel(%arg0: i32, %arg1: memref<4x9x9x4xbf16, #tpu.memory_space<vmem>>, %arg2: memref<36x128xbf16, #tpu.memory_space<vmem>>, %arg3: memref<1x128xf32, #tpu.memory_space<vmem>>, %arg4: memref<1152x128xbf16, #tpu.memory_space<vmem>>, %arg5: memref<1x128xf32, #tpu.memory_space<vmem>>, %arg6: memref<4x128xbf16, #tpu.memory_space<vmem>>, %arg7: memref<1x128xf32, #tpu.memory_space<vmem>>, %arg8: memref<1x64x128xbf16, #tpu.memory_space<vmem>>, %arg9: memref<1x10x10x128xbf16, #tpu.memory_space<vmem>>) attributes {dimension_semantics = [#tpu.dimension_semantics<parallel>], iteration_bounds = array<i64: 2>, scalar_prefetch = 0 : i64, scratch_operands = 1 : i64, tpu.core_type = #tpu.core_type<tc>, window_params = [{transform_indices = @transform_0, window_bounds = array<i64: 4, 9, 9, 4>}, {pipeline_mode = #tpu.pipeline_mode<synchronous>, transform_indices = @transform_1, window_bounds = array<i64: 36, 128>}, {pipeline_mode = #tpu.pipeline_mode<synchronous>, transform_indices = @transform_2, window_bounds = array<i64: 1, 128>}, {pipeline_mode = #tpu.pipeline_mode<synchronous>, transform_indices = @transform_3, window_bounds = array<i64: 1152, 128>}, {pipeline_mode = #tpu.pipeline_mode<synchronous>, transform_indices = @transform_4, window_bounds = array<i64: 1, 128>}, {pipeline_mode = #tpu.pipeline_mode<synchronous>, transform_indices = @transform_5, window_bounds = array<i64: 4, 128>}, {pipeline_mode = #tpu.pipeline_mode<synchronous>, transform_indices = @transform_6, window_bounds = array<i64: 1, 128>}, {transform_indices = @transform_7, window_bounds = array<i64: 1, 64, 128>}]} {
    %c0 = arith.constant 0 : index
    %c0_0 = arith.constant 0 : index
    %c0_1 = arith.constant 0 : index
    %c0_2 = arith.constant 0 : index
    %0 = vector.load %arg1[%c0, %c0_0, %c0_1, %c0_2] : memref<4x9x9x4xbf16, #tpu.memory_space<vmem>>, vector<1x8x8x4xbf16>
    %1 = vector.shape_cast %0 : vector<1x8x8x4xbf16> to vector<8x8x4xbf16>
    %c1 = arith.constant 1 : index
    %c0_3 = arith.constant 0 : index
    %c0_4 = arith.constant 0 : index
    %c0_5 = arith.constant 0 : index
    %2 = vector.load %arg1[%c1, %c0_3, %c0_4, %c0_5] : memref<4x9x9x4xbf16, #tpu.memory_space<vmem>>, vector<1x8x8x4xbf16>
    %3 = vector.shape_cast %2 : vector<1x8x8x4xbf16> to vector<8x8x4xbf16>
    %c0_6 = arith.constant 0 : index
    %c0_7 = arith.constant 0 : index
    %c1_8 = arith.constant 1 : index
    %c0_9 = arith.constant 0 : index
    %4 = vector.load %arg1[%c0_6, %c0_7, %c1_8, %c0_9] : memref<4x9x9x4xbf16, #tpu.memory_space<vmem>>, vector<1x8x8x4xbf16>
    %5 = vector.shape_cast %4 : vector<1x8x8x4xbf16> to vector<8x8x4xbf16>
    %c2 = arith.constant 2 : index
    %c0_10 = arith.constant 0 : index
    %c0_11 = arith.constant 0 : index
    %c0_12 = arith.constant 0 : index
    %6 = vector.load %arg1[%c2, %c0_10, %c0_11, %c0_12] : memref<4x9x9x4xbf16, #tpu.memory_space<vmem>>, vector<1x8x8x4xbf16>
    %7 = vector.shape_cast %6 : vector<1x8x8x4xbf16> to vector<8x8x4xbf16>
    %c3 = arith.constant 3 : index
    %c0_13 = arith.constant 0 : index
    %c0_14 = arith.constant 0 : index
    %c0_15 = arith.constant 0 : index
    %8 = vector.load %arg1[%c3, %c0_13, %c0_14, %c0_15] : memref<4x9x9x4xbf16, #tpu.memory_space<vmem>>, vector<1x8x8x4xbf16>
    %9 = vector.shape_cast %8 : vector<1x8x8x4xbf16> to vector<8x8x4xbf16>
    %c2_16 = arith.constant 2 : index
    %c0_17 = arith.constant 0 : index
    %c1_18 = arith.constant 1 : index
    %c0_19 = arith.constant 0 : index
    %10 = vector.load %arg1[%c2_16, %c0_17, %c1_18, %c0_19] : memref<4x9x9x4xbf16, #tpu.memory_space<vmem>>, vector<1x8x8x4xbf16>
    %11 = vector.shape_cast %10 : vector<1x8x8x4xbf16> to vector<8x8x4xbf16>
    %c0_20 = arith.constant 0 : index
    %c1_21 = arith.constant 1 : index
    %c0_22 = arith.constant 0 : index
    %c0_23 = arith.constant 0 : index
    %12 = vector.load %arg1[%c0_20, %c1_21, %c0_22, %c0_23] : memref<4x9x9x4xbf16, #tpu.memory_space<vmem>>, vector<1x8x8x4xbf16>
    %13 = vector.shape_cast %12 : vector<1x8x8x4xbf16> to vector<8x8x4xbf16>
    %c1_24 = arith.constant 1 : index
    %c1_25 = arith.constant 1 : index
    %c0_26 = arith.constant 0 : index
    %c0_27 = arith.constant 0 : index
    %14 = vector.load %arg1[%c1_24, %c1_25, %c0_26, %c0_27] : memref<4x9x9x4xbf16, #tpu.memory_space<vmem>>, vector<1x8x8x4xbf16>
    %15 = vector.shape_cast %14 : vector<1x8x8x4xbf16> to vector<8x8x4xbf16>
    %c0_28 = arith.constant 0 : index
    %c1_29 = arith.constant 1 : index
    %c1_30 = arith.constant 1 : index
    %c0_31 = arith.constant 0 : index
    %16 = vector.load %arg1[%c0_28, %c1_29, %c1_30, %c0_31] : memref<4x9x9x4xbf16, #tpu.memory_space<vmem>>, vector<1x8x8x4xbf16>
    %17 = vector.shape_cast %16 : vector<1x8x8x4xbf16> to vector<8x8x4xbf16>
    %18 = tpu.concatenate %1, %3, %5, %7, %9, %11, %13, %15, %17 in 2 : vector<8x8x4xbf16>, vector<8x8x4xbf16>, vector<8x8x4xbf16>, vector<8x8x4xbf16>, vector<8x8x4xbf16>, vector<8x8x4xbf16>, vector<8x8x4xbf16>, vector<8x8x4xbf16>, vector<8x8x4xbf16> -> vector<8x8x36xbf16>
    %19 = vector.shape_cast %18 : vector<8x8x36xbf16> to vector<64x36xbf16>
    %c0_32 = arith.constant 0 : index
    %c0_33 = arith.constant 0 : index
    %20 = vector.load %arg2[%c0_32, %c0_33] : memref<36x128xbf16, #tpu.memory_space<vmem>>, vector<36x128xbf16>
    %cst = arith.constant dense<0.000000e+00> : vector<64x128xf32>
    %21 = tpu.matmul %19, %20, %cst {dimension_numbers = #tpu.dot_dimension_numbers<[1], [0], [0], [1], [0, 0, 1, 1], [], []>} : vector<64x36xbf16>, vector<36x128xbf16>, vector<64x128xf32> -> vector<64x128xf32>
    %c0_34 = arith.constant 0 : index
    %c0_35 = arith.constant 0 : index
    %22 = vector.load %arg3[%c0_34, %c0_35] : memref<1x128xf32, #tpu.memory_space<vmem>>, vector<1x128xf32>
    %23 = vector.broadcast %22 : vector<1x128xf32> to vector<64x128xf32>
    %24 = arith.addf %21, %23 : vector<64x128xf32>
    %cst_36 = arith.constant 0.000000e+00 : f32
    %25 = vector.broadcast %cst_36 : f32 to vector<64x128xf32>
    %26 = arith.maximumf %24, %25 : vector<64x128xf32>
    %27 = arith.truncf %26 : vector<64x128xf32> to vector<64x128xbf16>
    %cst_37 = arith.constant 0.000000e+00 : bf16
    %28 = vector.broadcast %cst_37 : bf16 to vector<1x10x128xbf16>
    %cst_38 = arith.constant 0.000000e+00 : bf16
    %29 = vector.broadcast %cst_38 : bf16 to vector<8x1x128xbf16>
    %c0_39 = arith.constant 0 : index
    %c0_40 = arith.constant 0 : index
    %c0_41 = arith.constant 0 : index
    %c0_42 = arith.constant 0 : index
    %30 = vector.load %arg9[%c0_39, %c0_40, %c0_41, %c0_42] : memref<1x10x10x128xbf16, #tpu.memory_space<vmem>>, vector<1x1x10x128xbf16>
    %31 = vector.shape_cast %30 : vector<1x1x10x128xbf16> to vector<1x10x128xbf16>
    %32 = vector.shape_cast %28 : vector<1x10x128xbf16> to vector<1x1x10x128xbf16>
    tpu.vector_store %arg9[%c0_39, %c0_40, %c0_41, %c0_42], %32 {strides = array<i32>} : memref<1x10x10x128xbf16, #tpu.memory_space<vmem>>, vector<1x1x10x128xbf16>,
    %c0_43 = arith.constant 0 : index
    %c9 = arith.constant 9 : index
    %c0_44 = arith.constant 0 : index
    %c0_45 = arith.constant 0 : index
    %33 = vector.load %arg9[%c0_43, %c9, %c0_44, %c0_45] : memref<1x10x10x128xbf16, #tpu.memory_space<vmem>>, vector<1x1x10x128xbf16>
    %34 = vector.shape_cast %33 : vector<1x1x10x128xbf16> to vector<1x10x128xbf16>
    %35 = vector.shape_cast %28 : vector<1x10x128xbf16> to vector<1x1x10x128xbf16>
    tpu.vector_store %arg9[%c0_43, %c9, %c0_44, %c0_45], %35 {strides = array<i32>} : memref<1x10x10x128xbf16, #tpu.memory_space<vmem>>, vector<1x1x10x128xbf16>,
    %c0_46 = arith.constant 0 : index
    %c1_47 = arith.constant 1 : index
    %c0_48 = arith.constant 0 : index
    %c0_49 = arith.constant 0 : index
    %36 = vector.load %arg9[%c0_46, %c1_47, %c0_48, %c0_49] : memref<1x10x10x128xbf16, #tpu.memory_space<vmem>>, vector<1x8x1x128xbf16>
    %37 = vector.shape_cast %36 : vector<1x8x1x128xbf16> to vector<8x1x128xbf16>
    %38 = vector.shape_cast %29 : vector<8x1x128xbf16> to vector<1x8x1x128xbf16>
    tpu.vector_store %arg9[%c0_46, %c1_47, %c0_48, %c0_49], %38 {strides = array<i32>} : memref<1x10x10x128xbf16, #tpu.memory_space<vmem>>, vector<1x8x1x128xbf16>,
    %c0_50 = arith.constant 0 : index
    %c1_51 = arith.constant 1 : index
    %c9_52 = arith.constant 9 : index
    %c0_53 = arith.constant 0 : index
    %39 = vector.load %arg9[%c0_50, %c1_51, %c9_52, %c0_53] : memref<1x10x10x128xbf16, #tpu.memory_space<vmem>>, vector<1x8x1x128xbf16>
    %40 = vector.shape_cast %39 : vector<1x8x1x128xbf16> to vector<8x1x128xbf16>
    %41 = vector.shape_cast %29 : vector<8x1x128xbf16> to vector<1x8x1x128xbf16>
    tpu.vector_store %arg9[%c0_50, %c1_51, %c9_52, %c0_53], %41 {strides = array<i32>} : memref<1x10x10x128xbf16, #tpu.memory_space<vmem>>, vector<1x8x1x128xbf16>,
    %42 = vector.shape_cast %27 : vector<64x128xbf16> to vector<8x8x128xbf16>
    %c0_54 = arith.constant 0 : index
    %c1_55 = arith.constant 1 : index
    %c1_56 = arith.constant 1 : index
    %c0_57 = arith.constant 0 : index
    %43 = vector.load %arg9[%c0_54, %c1_55, %c1_56, %c0_57] : memref<1x10x10x128xbf16, #tpu.memory_space<vmem>>, vector<1x8x8x128xbf16>
    %44 = vector.shape_cast %43 : vector<1x8x8x128xbf16> to vector<8x8x128xbf16>
    %45 = vector.shape_cast %42 : vector<8x8x128xbf16> to vector<1x8x8x128xbf16>
    tpu.vector_store %arg9[%c0_54, %c1_55, %c1_56, %c0_57], %45 {strides = array<i32>} : memref<1x10x10x128xbf16, #tpu.memory_space<vmem>>, vector<1x8x8x128xbf16>,
    %c0_58 = arith.constant 0 : index
    %c0_59 = arith.constant 0 : index
    %c0_60 = arith.constant 0 : index
    %c0_61 = arith.constant 0 : index
    %46 = vector.load %arg9[%c0_58, %c0_59, %c0_60, %c0_61] : memref<1x10x10x128xbf16, #tpu.memory_space<vmem>>, vector<1x8x8x128xbf16>
    %47 = vector.shape_cast %46 : vector<1x8x8x128xbf16> to vector<8x8x128xbf16>
    %c0_62 = arith.constant 0 : index
    %c0_63 = arith.constant 0 : index
    %c1_64 = arith.constant 1 : index
    %c0_65 = arith.constant 0 : index
    %48 = vector.load %arg9[%c0_62, %c0_63, %c1_64, %c0_65] : memref<1x10x10x128xbf16, #tpu.memory_space<vmem>>, vector<1x8x8x128xbf16>
    %49 = vector.shape_cast %48 : vector<1x8x8x128xbf16> to vector<8x8x128xbf16>
    %c0_66 = arith.constant 0 : index
    %c0_67 = arith.constant 0 : index
    %c2_68 = arith.constant 2 : index
    %c0_69 = arith.constant 0 : index
    %50 = vector.load %arg9[%c0_66, %c0_67, %c2_68, %c0_69] : memref<1x10x10x128xbf16, #tpu.memory_space<vmem>>, vector<1x8x8x128xbf16>
    %51 = vector.shape_cast %50 : vector<1x8x8x128xbf16> to vector<8x8x128xbf16>
    %c0_70 = arith.constant 0 : index
    %c1_71 = arith.constant 1 : index
    %c0_72 = arith.constant 0 : index
    %c0_73 = arith.constant 0 : index
    %52 = vector.load %arg9[%c0_70, %c1_71, %c0_72, %c0_73] : memref<1x10x10x128xbf16, #tpu.memory_space<vmem>>, vector<1x8x8x128xbf16>
    %53 = vector.shape_cast %52 : vector<1x8x8x128xbf16> to vector<8x8x128xbf16>
    %c0_74 = arith.constant 0 : index
    %c1_75 = arith.constant 1 : index
    %c1_76 = arith.constant 1 : index
    %c0_77 = arith.constant 0 : index
    %54 = vector.load %arg9[%c0_74, %c1_75, %c1_76, %c0_77] : memref<1x10x10x128xbf16, #tpu.memory_space<vmem>>, vector<1x8x8x128xbf16>
    %55 = vector.shape_cast %54 : vector<1x8x8x128xbf16> to vector<8x8x128xbf16>
    %c0_78 = arith.constant 0 : index
    %c1_79 = arith.constant 1 : index
    %c2_80 = arith.constant 2 : index
    %c0_81 = arith.constant 0 : index
    %56 = vector.load %arg9[%c0_78, %c1_79, %c2_80, %c0_81] : memref<1x10x10x128xbf16, #tpu.memory_space<vmem>>, vector<1x8x8x128xbf16>
    %57 = vector.shape_cast %56 : vector<1x8x8x128xbf16> to vector<8x8x128xbf16>
    %c0_82 = arith.constant 0 : index
    %c2_83 = arith.constant 2 : index
    %c0_84 = arith.constant 0 : index
    %c0_85 = arith.constant 0 : index
    %58 = vector.load %arg9[%c0_82, %c2_83, %c0_84, %c0_85] : memref<1x10x10x128xbf16, #tpu.memory_space<vmem>>, vector<1x8x8x128xbf16>
    %59 = vector.shape_cast %58 : vector<1x8x8x128xbf16> to vector<8x8x128xbf16>
    %c0_86 = arith.constant 0 : index
    %c2_87 = arith.constant 2 : index
    %c1_88 = arith.constant 1 : index
    %c0_89 = arith.constant 0 : index
    %60 = vector.load %arg9[%c0_86, %c2_87, %c1_88, %c0_89] : memref<1x10x10x128xbf16, #tpu.memory_space<vmem>>, vector<1x8x8x128xbf16>
    %61 = vector.shape_cast %60 : vector<1x8x8x128xbf16> to vector<8x8x128xbf16>
    %c0_90 = arith.constant 0 : index
    %c2_91 = arith.constant 2 : index
    %c2_92 = arith.constant 2 : index
    %c0_93 = arith.constant 0 : index
    %62 = vector.load %arg9[%c0_90, %c2_91, %c2_92, %c0_93] : memref<1x10x10x128xbf16, #tpu.memory_space<vmem>>, vector<1x8x8x128xbf16>
    %63 = vector.shape_cast %62 : vector<1x8x8x128xbf16> to vector<8x8x128xbf16>
    %64 = tpu.concatenate %47, %49, %51, %53, %55, %57, %59, %61, %63 in 2 : vector<8x8x128xbf16>, vector<8x8x128xbf16>, vector<8x8x128xbf16>, vector<8x8x128xbf16>, vector<8x8x128xbf16>, vector<8x8x128xbf16>, vector<8x8x128xbf16>, vector<8x8x128xbf16>, vector<8x8x128xbf16> -> vector<8x8x1152xbf16>
    %65 = vector.shape_cast %64 : vector<8x8x1152xbf16> to vector<64x1152xbf16>
    %c0_94 = arith.constant 0 : index
    %c0_95 = arith.constant 0 : index
    %66 = vector.load %arg4[%c0_94, %c0_95] : memref<1152x128xbf16, #tpu.memory_space<vmem>>, vector<1152x128xbf16>
    %cst_96 = arith.constant dense<0.000000e+00> : vector<64x128xf32>
    %67 = tpu.matmul %65, %66, %cst_96 {dimension_numbers = #tpu.dot_dimension_numbers<[1], [0], [0], [1], [0, 0, 1, 1], [], []>} : vector<64x1152xbf16>, vector<1152x128xbf16>, vector<64x128xf32> -> vector<64x128xf32>
    %c0_97 = arith.constant 0 : index
    %c0_98 = arith.constant 0 : index
    %68 = vector.load %arg5[%c0_97, %c0_98] : memref<1x128xf32, #tpu.memory_space<vmem>>, vector<1x128xf32>
    %69 = vector.broadcast %68 : vector<1x128xf32> to vector<64x128xf32>
    %70 = arith.addf %67, %69 : vector<64x128xf32>
    %c3_99 = arith.constant 3 : index
    %c0_100 = arith.constant 0 : index
    %c0_101 = arith.constant 0 : index
    %c0_102 = arith.constant 0 : index
    %71 = vector.load %arg1[%c3_99, %c0_100, %c0_101, %c0_102] : memref<4x9x9x4xbf16, #tpu.memory_space<vmem>>, vector<1x8x8x4xbf16>
    %72 = vector.shape_cast %71 : vector<1x8x8x4xbf16> to vector<8x8x4xbf16>
    %73 = vector.shape_cast %72 : vector<8x8x4xbf16> to vector<64x4xbf16>
    %c0_103 = arith.constant 0 : index
    %c0_104 = arith.constant 0 : index
    %74 = vector.load %arg6[%c0_103, %c0_104] : memref<4x128xbf16, #tpu.memory_space<vmem>>, vector<4x128xbf16>
    %cst_105 = arith.constant dense<0.000000e+00> : vector<64x128xf32>
    %75 = tpu.matmul %73, %74, %cst_105 {dimension_numbers = #tpu.dot_dimension_numbers<[1], [0], [0], [1], [0, 0, 1, 1], [], []>} : vector<64x4xbf16>, vector<4x128xbf16>, vector<64x128xf32> -> vector<64x128xf32>
    %c0_106 = arith.constant 0 : index
    %c0_107 = arith.constant 0 : index
    %76 = vector.load %arg7[%c0_106, %c0_107] : memref<1x128xf32, #tpu.memory_space<vmem>>, vector<1x128xf32>
    %77 = vector.broadcast %76 : vector<1x128xf32> to vector<64x128xf32>
    %78 = arith.addf %75, %77 : vector<64x128xf32>
    %79 = arith.addf %70, %78 : vector<64x128xf32>
    %cst_108 = arith.constant 0.000000e+00 : f32
    %80 = vector.broadcast %cst_108 : f32 to vector<64x128xf32>
    %81 = arith.maximumf %79, %80 : vector<64x128xf32>
    %82 = arith.truncf %81 : vector<64x128xf32> to vector<64x128xbf16>
    %83 = vector.shape_cast %82 : vector<64x128xbf16> to vector<1x64x128xbf16>
    %c0_109 = arith.constant 0 : index
    %c0_110 = arith.constant 0 : index
    %c0_111 = arith.constant 0 : index
    %84 = vector.load %arg8[%c0_109, %c0_110, %c0_111] : memref<1x64x128xbf16, #tpu.memory_space<vmem>>, vector<1x64x128xbf16>
    tpu.vector_store %arg8[%c0_109, %c0_110, %c0_111], %83 {strides = array<i32>} : memref<1x64x128xbf16, #tpu.memory_space<vmem>>, vector<1x64x128xbf16>,
    return
  }
  func.func @transform_0(%arg0: i32) -> (i32, i32, i32, i32) {
    %c0_i32 = arith.constant 0 : i32
    %c0_i32_0 = arith.constant 0 : i32
    %c0_i32_1 = arith.constant 0 : i32
    %c0_i32_2 = arith.constant 0 : i32
    return %arg0, %c0_i32, %c0_i32_0, %c0_i32_1 : i32, i32, i32, i32
  }
  func.func @transform_1(%arg0: i32) -> (i32, i32) {
    %c0_i32 = arith.constant 0 : i32
    %c0_i32_0 = arith.constant 0 : i32
    %c0_i32_1 = arith.constant 0 : i32
    return %c0_i32, %c0_i32_0 : i32, i32
  }
  func.func @transform_2(%arg0: i32) -> (i32, i32) {
    %c0_i32 = arith.constant 0 : i32
    %c0_i32_0 = arith.constant 0 : i32
    %c0_i32_1 = arith.constant 0 : i32
    return %c0_i32, %c0_i32_0 : i32, i32
  }
  func.func @transform_3(%arg0: i32) -> (i32, i32) {
    %c0_i32 = arith.constant 0 : i32
    %c0_i32_0 = arith.constant 0 : i32
    %c0_i32_1 = arith.constant 0 : i32
    return %c0_i32, %c0_i32_0 : i32, i32
  }
  func.func @transform_4(%arg0: i32) -> (i32, i32) {
    %c0_i32 = arith.constant 0 : i32
    %c0_i32_0 = arith.constant 0 : i32
    %c0_i32_1 = arith.constant 0 : i32
    return %c0_i32, %c0_i32_0 : i32, i32
  }
  func.func @transform_5(%arg0: i32) -> (i32, i32) {
    %c0_i32 = arith.constant 0 : i32
    %c0_i32_0 = arith.constant 0 : i32
    %c0_i32_1 = arith.constant 0 : i32
    return %c0_i32, %c0_i32_0 : i32, i32
  }
  func.func @transform_6(%arg0: i32) -> (i32, i32) {
    %c0_i32 = arith.constant 0 : i32
    %c0_i32_0 = arith.constant 0 : i32
    %c0_i32_1 = arith.constant 0 : i32
    return %c0_i32, %c0_i32_0 : i32, i32
  }
  func.func @transform_7(%arg0: i32) -> (i32, i32, i32) {
    %c0_i32 = arith.constant 0 : i32
    %c0_i32_0 = arith.constant 0 : i32
    %c0_i32_1 = arith.constant 0 : i32
    return %arg0, %c0_i32, %c0_i32_0 : i32, i32, i32
  }
}

</mosaic_0001>

<bundles_post_ra>
// kernel: basic_block_forward.1
= control target key start
LH: loop header
LB: loop body
LE: loop exit
PB: predicated region body
PF: predicated region fallthrough
CT: control target
= control target key end

     0   :  { %s3997_s24 = smov 0   ;;  %s4875_s0 = inlined_call_operand.vmem [shape: bf16[8,9,9,4], index: 0, kind: input, shape index: {}]   ;;  %s4876_s1 = inlined_call_operand.vmem [shape: bf16[36,128], index: 1, kind: input, shape index: {}]   ;;  %s4877_s2 = inlined_call_operand.vmem [shape: f32[1,128], index: 2, kind: input, shape index: {}]   ;;  %s4878_s3 = inlined_call_operand.vmem [shape: bf16[1152,128], index: 3, kind: input, shape index: {}]   ;;  %s4879_s4 = inlined_call_operand.vmem [shape: f32[1,128], index: 4, kind: input, shape index: {}]   ;;  %s4880_s5 = inlined_call_operand.vmem [shape: bf16[4,128], index: 5, kind: input, shape index: {}]   ;;  %s4881_s6 = inlined_call_operand.vmem [shape: f32[1,128], index: 6, kind: input, shape index: {}]   ;;  %s4882_s7 = inlined_call_operand.vmem [shape: bf16[2,64,128], index: 7, kind: output, shape index: {}]  }
   0x1 LB: > { %s4003_s25 = sadd.s32 4294967295, %s3946_s24   ;;  %p3076_p0 = scmp.ge.s32.totalorder %s3946_s24, 1  ;;  %s3946_s24 = sphi %s3997_s24, %s17_s24  }
   0x2   : > { %p239_p1 = scmp.lt.s32.totalorder %s3946_s24, 3 }
   0x4   : > { %p240_p2 = pnand %p3076_p0, %p239_p1 }
   0x5   : > { %s3077_s26 = sshll.u32 (!%p240_p2), %s4003_s25, 2  ;;  %s3948_s8 = smov (!%p240_p2), 4   ;;  %vm1070_vm0 = vcmask (!%p240_p2), 1041408   ;;  %vm866_vm1 = vcmask (!%p240_p2), 31744   ;;  %vm891_vm2 = vcmask (!%p240_p2), 64512   ;;  %vm908_vm3 = vcmask (!%p240_p2), 97280  }
   0x6   : > { %243 = sbr.rel (%p240_p2) target bundleno = 792 (0x318), region = 48  ;;  %p273_p3 = scmp.lt.s32.totalorder (!%p240_p2), %s3077_s26, 7  ;;  %vm925_vm4 = vcmask (!%p240_p2), 130048   ;;  %vm942_vm5 = vcmask (!%p240_p2), 162816   ;;  %vm959_vm6 = vcmask (!%p240_p2), 195584   ;;  %vm976_vm7 = vcmask (!%p240_p2), 228352  }
   0x7   : > { %s3949_s9 = smov (!%p240_p2), 12   ;;  %s3950_s10 = smov (!%p240_p2), 8   ;;  %vm993_vm8 = vcmask (!%p240_p2), 261120   ;;  %vm1057_vm9 = vcmask (!%p240_p2), 293888   ;;  %vm1157_vm10 = vcmask (!%p240_p2), 1040384   ;;  %vm1310_vm15 = vcmask (!%p240_p2), 1043456  }
   0x8   : > { %s3951_s11 = smov (!%p240_p2), 16   ;;  %s3952_s12 = smov (!%p240_p2), 20   ;;  %vm1158_vm11 = vsmask.f32 (!%p240_p2), 256  ;;  %vm1184_vm12 = vsmask.f32 (!%p240_p2), 7938 }
   0x9   : > { %s3953_s13 = smov (!%p240_p2), 24   ;;  %s3954_s20 = smov (!%p240_p2), 28   ;;  %vm4388_vm13 = vmand (!%p240_p2), %vm1157_vm10, %vm1158_vm11 }
   0xa   : > { %s3955_s21 = smov (!%p240_p2), 32   ;;  %vm4395_vm14 = vmand (!%p240_p2), %vm1157_vm10, %vm1184_vm12  ;;  %p279_p4 = scmp.lt.s32.totalorder (!%p240_p2), %s4003_s25, 1 }
   0xd   : > { %s4890_s26 = smov (!%p273_p3, %s3077_s26), 7  ;;  %s4892_s25 = smov (!%p279_p4, %s4003_s25), 1 }
   0xe   : > { %s3719_s27 = smul.u32 72, %s4890_s26 }
  0x10   : > { %s4011_s30 = scalar_lea.vmem %s4875_s0, %s3719_s27 }
  0x11   : > { %v3737_v0 = vld [vmem:[%s4011_s30 + $0x58] ss:$0 sps:$4 sm:$0xff]   ;;  %v3738_v1 = vld [vmem:[%s4011_s30 + $0x48] ss:$0 sps:$4 sm:$0xff]   ;;  %v3739_v2 = vld [vmem:[%s4011_s30 + $0x60] ss:$0 sps:$4 sm:$0xff]  }
  0x12   : > { %390 = vrot.lane.b32.xlu1 %v3737_v0, %s3948_s8  ;;  %386 = vrot.lane.b32.xlu0 %v3738_v1, %s3948_s8  ;;  %v3740_v3 = vld [vmem:[%s4011_s30 + $0x50] ss:$0 sps:$4 sm:$0xff]   ;;  %v3090_v4 = vld [vmem:[%s4011_s30 + $0x98] sm:$0xf] }
  0x13   : > { %v3089_v5 = vld [vmem:[%s4011_s30 + $0x90] sm:$0xf]  ;;  %v4022_v6 = vld [vmem:[%s4011_s30 + $0x8] sm:$0xf]  ;;  %v303_v7 = vld [vmem:[%s4011_s30 + $0xc] sm:$0x1]  ;;  %v3154_v13 = vcombine.low %v3090_v4, %v3090_v4 }
  0x14   : > { %v4026_v8 = vld [vmem:[%s4011_s30] sm:$0xf]  ;;  %v3146_v9 = vcombine.low %v4022_v6, %v303_v7  ;;  %v302_v10 = vld [vmem:[%s4011_s30 + $0x4] sm:$0x1]  ;;  %v4031_v11 = vld [vmem:[%s4011_s30 + $0x18] sm:$0xf]  ;;  %v3153_v18 = vcombine.low %v3089_v5, %v3089_v5 }
  0x15   : > { %v305_v12 = vld [vmem:[%s4011_s30 + $0x1c] sm:$0x1]  ;;  %v3145_v14 = vcombine.low %v4026_v8, %v302_v10  ;;  %v4038_v16 = vld [vmem:[%s4011_s30 + $0x10] sm:$0xf]  ;;  %v304_v17 = vld [vmem:[%s4011_s30 + $0x14] sm:$0x1] }
  0x16   : > { %392 = vrot.lane.b32.xlu1 %v3739_v2, %s3948_s8  ;;  %v3148_v15 = vcombine.low %v4031_v11, %v305_v12  ;;  %388 = vrot.lane.b32.xlu0 %v3740_v3, %s3948_s8  ;;  %v450_v19 = vshrl.u32 %v3146_v9, 16  ;;  %v452_v20 = vshll.u32 %v3146_v9, 16  ;;  %v3147_v21 = vcombine.low %v4038_v16, %v304_v17  ;;  %v3106_v35 = vld [vmem:[%s4011_s30 + $0x9c] sm:$0x1]  ;;  %v3092_v37 = vld [vmem:[%s4011_s30 + $0xa8] sm:$0xf] }
  0x17   : > { %v443_v22 = vshrl.u32 %v3145_v14, 16  ;;  %v445_v23 = vshll.u32 %v3145_v14, 16  ;;  %v3105_v38 = vld [vmem:[%s4011_s30 + $0x94] sm:$0x1]  ;;  %v3091_v39 = vld [vmem:[%s4011_s30 + $0xa0] sm:$0xf]  ;;  %v3170_v40 = vcombine.low %v3090_v4, %v3106_v35  ;;  %v3156_v42 = vcombine.low %v3092_v37, %v3092_v37 }
  0x18   : > { %v466_v24 = vshll.u32 %v3148_v15, 16  ;;  %v454_v25 = vrot.slane %v452_v20, 1  ;;  %v459_v26 = vshll.u32 %v3147_v21, 16  ;;  %v464_v28 = vshrl.u32 %v3148_v15, 16  ;;  %v3108_v41 = vld [vmem:[%s4011_s30 + $0xac] sm:$0x1] }
  0x19   : > { %v447_v27 = vrot.slane %v445_v23, 1  ;;  %v457_v31 = vshrl.u32 %v3147_v21, 16  ;;  %v3169_v43 = vcombine.low %v3089_v5, %v3105_v38  ;;  %v3107_v44 = vld [vmem:[%s4011_s30 + $0xa4] sm:$0x1]  ;;  %v3155_v45 = vcombine.low %v3091_v39, %v3091_v39  ;;  %v3753_v48 = vld [vmem:[%s4011_s30 + $0xe0] ss:$0 sps:$4 sm:$0xff]  }
  0x1a   : > { %540 = vrot.lane.b32.xlu1 %v3154_v13, %s3949_s9  ;;  %v468_v29 = vrot.slane %v466_v24, 1  ;;  %538 = vrot.lane.b32.xlu0 %v3153_v18, %s3949_s9  ;;  %v455_v30 = vor.u32 %v454_v25, %v450_v19  ;;  %v461_v32 = vrot.slane %v459_v26, 1  ;;  %v3172_v46 = vcombine.low %v3092_v37, %v3108_v41  ;;  %v3754_v50 = vld [vmem:[%s4011_s30 + $0xd8] ss:$0 sps:$4 sm:$0xff]   ;;  %v3130_v52 = vld [vmem:[%s4011_s30 + $0x14] sm:$0x1] }
  0x1b   : > { %v448_v33 = vor.u32 %v447_v27, %v443_v22  ;;  %v3171_v47 = vcombine.low %v3091_v39, %v3107_v44  ;;  %v628_v49 = vshll.u32 %v3170_v40, 16  ;;  %v621_v51 = vshll.u32 %v3169_v43, 16  ;;  %v3129_v53 = vld [vmem:[%s4011_s30 + $0xc] sm:$0x1]  ;;  %v3755_v54 = vld [vmem:[%s4011_s30 + $0xf0] ss:$0 sps:$4 sm:$0xff]  }
  0x1c   : > { %v469_v34 = vor.u32 %v468_v29, %v464_v28  ;;  %v462_v36 = vor.u32 %v461_v32, %v457_v31  ;;  %v4063_v55 = vld [vmem:[%s4011_s30 + $0x10] sm:$0xf]  ;;  %v626_v56 = vshrl.u32 %v3170_v40, 16  ;;  %v642_v58 = vshll.u32 %v3172_v46, 16  ;;  %v4067_v60 = vld [vmem:[%s4011_s30 + $0x8] sm:$0xf] }
  0x1d   : > { %v630_v57 = vrot.slane %v628_v49, 1  ;;  %v635_v59 = vshll.u32 %v3171_v47, 16  ;;  %v3756_v61 = vld [vmem:[%s4011_s30 + $0xe8] ss:$0 sps:$4 sm:$0xff]   ;;  %v619_v62 = vshrl.u32 %v3169_v43, 16  ;;  %v623_v63 = vrot.slane %v621_v51, 1 }
  0x1e   : > { %500 = vrot.lane.b32.xlu1 %v455_v30, %s3950_s10  ;;  %498 = vrot.lane.b32.xlu0 %v448_v33, %s3950_s10  ;;  %v4072_v0 = vcombine.low %v4063_v55, %v3130_v52  ;;  %v4075_v1 = vcombine.low %v4067_v60, %v3129_v53  ;;  %v3132_v2 = vld [vmem:[%s4011_s30 + $0x24] sm:$0x1]  ;;  %v640_v3 = vshrl.u32 %v3172_v46, 16  ;;  %v644_v5 = vrot.slane %v642_v58, 1  ;;  %v4080_v10 = vld [vmem:[%s4011_s30 + $0x20] sm:$0xf] }
  0x1f   : > { %v631_v4 = vor.u32 %v630_v57, %v626_v56  ;;  %v633_v7 = vshrl.u32 %v3171_v47, 16  ;;  %v637_v9 = vrot.slane %v635_v59, 1  ;;  %v624_v12 = vor.u32 %v623_v63, %v619_v62  ;;  %v4087_v14 = vld [vmem:[%s4011_s30 + $0x18] sm:$0xf]  ;;  %v3131_v15 = vld [vmem:[%s4011_s30 + $0x1c] sm:$0x1] }
  0x20   : > { %v4084_v13 = vcombine.low %v4080_v10, %v3132_v2  ;;  %v804_v17 = vshll.u32 %v4072_v0, 16  ;;  %v797_v18 = vshll.u32 %v4075_v1, 16  ;;  %v4093_v19 = vld [vmem:[%s4011_s30 + $0x28] sm:$0xf]  ;;  %v307_v20 = vld [vmem:[%s4011_s30 + $0x2c] sm:$0x1]  ;;  %v645_v24 = vor.u32 %v644_v5, %v640_v3 }
  0x21   : > { %v4097_v21 = vld [vmem:[%s4011_s30 + $0x20] sm:$0xf]  ;;  %v306_v22 = vld [vmem:[%s4011_s30 + $0x24] sm:$0x1]  ;;  %v4101_v23 = vld [vmem:[%s4011_s30 + $0x38] sm:$0xf]  ;;  %v4105_v25 = vcombine.low %v4087_v14, %v3131_v15  ;;  %v638_v27 = vor.u32 %v637_v9, %v633_v7  ;;  %v4111_v29 = vcombine.low %v4093_v19, %v307_v20  ;;  %v3178_v32 = vcombine.low %v4063_v55, %v4063_v55 }
  0x22   : > { %504 = vrot.lane.b32.xlu1 %v469_v34, %s3950_s10  ;;  %502 = vrot.lane.b32.xlu0 %v462_v36, %s3950_s10  ;;  %v309_v26 = vld [vmem:[%s4011_s30 + $0x3c] sm:$0x1]  ;;  %v818_v28 = vshll.u32 %v4084_v13, 16  ;;  %v4114_v30 = vld [vmem:[%s4011_s30 + $0x30] sm:$0xf]  ;;  %v802_v33 = vshrl.u32 %v4072_v0, 16  ;;  %v4124_v37 = vcombine.low %v4097_v21, %v306_v22  ;;  %v3180_v56 = vcombine.low %v4080_v10, %v4080_v10 }
  0x23   : > { %v308_v31 = vld [vmem:[%s4011_s30 + $0x34] sm:$0x1]  ;;  %v795_v34 = vshrl.u32 %v4075_v1, 16  ;;  %v816_v35 = vshrl.u32 %v4084_v13, 16  ;;  %v809_v36 = vshrl.u32 %v4105_v25, 16  ;;  %v4127_v38 = vcombine.low %v4101_v23, %v309_v26  ;;  %v3801_v3 = vld [vmem:[%s4876_s1] sm:$0xff]  }
  0x24   : > { %v3110_v39 = vld [vmem:[%s4011_s30 + $0xbc] sm:$0x1]  ;;  %v4131_v40 = vrot.slane %v804_v17, 1  ;;  %v4133_v41 = vrot.slane %v797_v18, 1  ;;  %v4137_v43 = vcombine.low %v4114_v30, %v308_v31  ;;  %v3109_v44 = vld [vmem:[%s4011_s30 + $0xb4] sm:$0x1]  ;;  %3629 = vmatprep.subr.bf16.mxu0 %v3801_v3 }
  0x25   : > { %v4143_v46 = vrot.slane %v818_v28, 1  ;;  %v480_v47 = vshll.u32 %v4111_v29, 16  ;;  %v4150_v49 = vld [vmem:[%s4011_s30 + $0xb0] sm:$0xf]  ;;  %v3112_v51 = vld [vmem:[%s4011_s30 + $0xcc] sm:$0x1]  ;;  %3630 = vmatpush3.bf16.msra.mxu0 %v3801_v3 }
  0x26   : > { %544 = vrot.lane.b32.xlu1 %v3156_v42, %s3949_s9  ;;  %542 = vrot.lane.b32.xlu0 %v3155_v45, %s3949_s9  ;;  %v811_v42 = vshll.u32 %v4105_v25, 16  ;;  %v3177_v45 = vcombine.low %v4067_v60, %v4067_v60  ;;  %v473_v52 = vshll.u32 %v4124_v37, 16  ;;  %v494_v53 = vshll.u32 %v4127_v38, 16  ;;  %v3111_v55 = vld [vmem:[%s4011_s30 + $0xc4] sm:$0x1] }
  0x27   : > { %v487_v58 = vshll.u32 %v4137_v43, 16  ;;  %v4167_v59 = vld [vmem:[%s4011_s30 + $0xc8] sm:$0xf]  ;;  %v3179_v60 = vcombine.low %v4087_v14, %v4087_v14  ;;  %v471_v62 = vshrl.u32 %v4124_v37, 16  ;;  %v4178_v2 = vld [vmem:[%s4011_s30 + $0xc0] sm:$0xf] }
  0x28   : > { %v813_v57 = vrot.slane %v811_v42, 1  ;;  %v4175_v63 = vcombine.low %v4167_v59, %v3112_v51  ;;  %v3765_v5 = vld [vmem:[%s4011_s30 + $0x58] ss:$0 sps:$4 sm:$0xff]   ;;  %v482_v7 = vrot.slane %v480_v47, 1  ;;  %v492_v9 = vshrl.u32 %v4127_v38, 16 }
  0x29   : > { %v4189_v10 = vcombine.low %v4178_v2, %v3111_v55  ;;  %v3766_v14 = vld [vmem:[%s4011_s30 + $0x50] ss:$0 sps:$4 sm:$0xff]   ;;  %v475_v15 = vrot.slane %v473_v52, 1  ;;  %v496_v17 = vrot.slane %v494_v53, 1  ;;  %v485_v18 = vshrl.u32 %v4137_v43, 16 }
  0x2a   : > { %580 = vrot.lane.b32.xlu1 %v3753_v48, %s3951_s11  ;;  %578 = vrot.lane.b32.xlu0 %v3754_v50, %s3951_s11  ;;  %v4147_v48 = vld [vmem:[%s4011_s30 + $0xb8] sm:$0xf]  ;;  %v489_v22 = vrot.slane %v487_v58, 1  ;;  %v670_v28 = vshll.u32 %v4175_v63, 16  ;;  %v3768_v37 = vld [vmem:[%s4011_s30 + $0x60] ss:$0 sps:$4 sm:$0xff]   ;;  %v807_v42 = vor.u32 %v4131_v40, %v802_v33  ;;  %v800_v43 = vor.u32 %v4133_v41, %v795_v34 }
  0x2b   : > { %v4153_v50 = vcombine.low %v4147_v48, %v3110_v39  ;;  %v814_v0 = vor.u32 %v813_v57, %v809_v36  ;;  %v3769_v33 = vld [vmem:[%s4011_s30 + $0x70] ss:$0 sps:$4 sm:$0xff]   ;;  %v3770_v40 = vld [vmem:[%s4011_s30 + $0x68] ss:$0 sps:$4 sm:$0xff]   ;;  %v3771_v1 = vld [vmem:[%s4011_s30 + $0x80] ss:$0 sps:$4 sm:$0xff]   ;;  %v476_v25 = vor.u32 %v475_v15, %v471_v62  ;;  %v3158_v41 = vcombine.low %v4147_v48, %v4147_v48 }
  0x2c   : > { %v3772_v34 = vld [vmem:[%s4011_s30 + $0x78] ss:$0 sps:$4 sm:$0xff]   ;;  %v490_v36 = vor.u32 %v489_v22, %v485_v18  ;;  %v3159_v47 = vcombine.low %v4178_v2, %v4178_v2  ;;  %v3787_v48 = vld [vmem:[%s4011_s30 + $0x110] ss:$0 sps:$4 sm:$0xff]   ;;  %v3788_v52 = vld [vmem:[%s4011_s30 + $0x108] ss:$0 sps:$4 sm:$0xff]  }
  0x2d   : > { %v3786_v51 = vld [vmem:[%s4011_s30 + $0xf8] ss:$0 sps:$4 sm:$0xff]   ;;  %v668_v53 = vshrl.u32 %v4175_v63, 16  ;;  %v672_v55 = vrot.slane %v670_v28, 1  ;;  %v661_v57 = vshrl.u32 %v4189_v10, 16 }
  0x2e   : > { %584 = vrot.lane.b32.xlu1 %v3755_v54, %s3951_s11  ;;  %582 = vrot.lane.b32.xlu0 %v3756_v61, %s3951_s11  ;;  %v4159_v54 = vcombine.low %v4150_v49, %v3109_v44  ;;  %v478_v61 = vshrl.u32 %v4111_v29, 16  ;;  %v3767_v29 = vld [vmem:[%s4011_s30 + $0x68] ss:$0 sps:$4 sm:$0xff]   ;;  %v821_v44 = vor.u32 %v4143_v46, %v816_v35  ;;  %v497_v35 = vor.u32 %v496_v17, %v492_v9  ;;  %v3120_v3 = vld [vmem:[%s4011_s30 + $0x40] sm:$0xf] }
  0x2f   : > { %v3160_v46 = vcombine.low %v4167_v59, %v4167_v59  ;;  %v673_v59 = vor.u32 %v672_v55, %v668_v53  ;;  %v3117_v62 = vld [vmem:[%s4011_s30 + $0x28] sm:$0xf]  ;;  %v3184_v9 = vcombine.low %v3120_v3, %v3120_v3  ;;  %v3135_v15 = vld [vmem:[%s4011_s30 + $0x3c] sm:$0x1]  ;;  %v3797_v18 = vld [vmem:[%s4011_s30 + $0x78] ss:$0 sps:$4 sm:$0xff]  }
  0x30   : > { %v649_v20 = vshll.u32 %v4159_v54, 16  ;;  %v647_v26 = vshrl.u32 %v4159_v54, 16  ;;  %v483_v13 = vor.u32 %v482_v7, %v478_v61  ;;  %v3118_v61 = vld [vmem:[%s4011_s30 + $0x30] sm:$0xf]  ;;  %v3134_v54 = vld [vmem:[%s4011_s30 + $0x34] sm:$0x1]  ;;  %v3181_v2 = vcombine.low %v3117_v62, %v3117_v62 }
  0x31   : > { %v3182_v63 = vcombine.low %v3118_v61, %v3118_v61  ;;  %v3198_v7 = vcombine.low %v3118_v61, %v3134_v54 }
  0x32   : > { %676 = vrot.lane.b32.xlu1 %v631_v4, %s3952_s12  ;;  %674 = vrot.lane.b32.xlu0 %v624_v12, %s3952_s12  ;;  %v3802_v4 = vld [vmem:[%s4876_s1 + $0x8] sm:$0xff]   ;;  %v656_v12 = vshll.u32 %v4153_v50, 16  ;;  %v651_v38 = vrot.slane %v649_v20, 1 }
  0x33   : > { %3631 = vmatprep.subr.bf16.mxu0 %v3802_v4  ;;  %v832_v20 = vshll.u32 %v3198_v7, 16  ;;  %v830_v28 = vshrl.u32 %v3198_v7, 16 }
  0x34   : > { %v658_v31 = vrot.slane %v656_v12, 1  ;;  %3632 = vmatpush3.bf16.msra.mxu0 %v3802_v4  ;;  %v3133_v4 = vld [vmem:[%s4011_s30 + $0x2c] sm:$0x1]  ;;  %v3136_v12 = vld [vmem:[%s4011_s30 + $0x44] sm:$0x1] }
  0x35   : > { %v3200_v17 = vcombine.low %v3120_v3, %v3136_v12 }
  0x36   : > { %680 = vrot.lane.b32.xlu1 %v645_v24, %s3952_s12  ;;  %678 = vrot.lane.b32.xlu0 %v638_v27, %s3952_s12  ;;  %v654_v24 = vshrl.u32 %v4153_v50, 16  ;;  %v3803_v27 = vld [vmem:[%s4876_s1 + $0x10] ss:$0 sps:$4 sm:$0x33]   ;;  %v3785_v50 = vld [vmem:[%s4011_s30 + $0x100] ss:$0 sps:$4 sm:$0xff]  }
  0x37   : > { %v1072_v39 = vsel %vm1070_vm0, %v3803_v27, 0  ;;  %3717 = vmatprep.subr.msk.bf16.mxu0 %vm1070_vm0, %v3803_v27  ;;  %v3799_v27 = vld [vmem:[%s4011_s30 + $0x88] ss:$0 sps:$4 sm:$0xff]  }
  0x38   : > { %3634 = vmatpush3.bf16.msra.mxu0 %v1072_v39 }
  0x3a   : > { %716 = vrot.lane.b32.xlu1 %v3178_v32, %s3953_s13  ;;  %714 = vrot.lane.b32.xlu0 %v3177_v45, %s3953_s13  ;;  %v663_v32 = vshll.u32 %v4189_v10, 16  ;;  %v3157_v45 = vcombine.low %v4150_v49, %v4150_v49  ;;  %v659_v49 = vor.u32 %v658_v31, %v654_v24  ;;  %v3197_v10 = vcombine.low %v3117_v62, %v3133_v4  ;;  %v3798_v24 = vld [vmem:[%s4011_s30 + $0x70] ss:$0 sps:$4 sm:$0xff]  }
  0x3b   : > { %v846_v31 = vshll.u32 %v3200_v17, 16 }
  0x3c   : > { %v665_v58 = vrot.slane %v663_v32, 1  ;;  %v3800_v32 = vld [vmem:[%s4011_s30 + $0x80] ss:$0 sps:$4 sm:$0xff]  }
  0x3e   : > { %720 = vrot.lane.b32.xlu1 %v3180_v56, %s3953_s13  ;;  %718 = vrot.lane.b32.xlu0 %v3179_v60, %s3953_s13  ;;  %v652_v56 = vor.u32 %v651_v38, %v647_v26  ;;  %v666_v60 = vor.u32 %v665_v58, %v661_v57  ;;  %v825_v26 = vshll.u32 %v3197_v10, 16 }
  0x40   : > { %v827_v38 = vrot.slane %v825_v26, 1 }
  0x42   : > { %756 = vrot.lane.b32.xlu1 %v3765_v5, %s3954_s20  ;;  %754 = vrot.lane.b32.xlu0 %v3766_v14, %s3954_s20  ;;  %v3119_v5 = vld [vmem:[%s4011_s30 + $0x38] sm:$0xf] }
  0x43   : > { %v3183_v14 = vcombine.low %v3119_v5, %v3119_v5  ;;  %v3199_v22 = vcombine.low %v3119_v5, %v3135_v15 }
  0x45   : > { %v839_v39 = vshll.u32 %v3199_v22, 16 }
  0x46   : > { %760 = vrot.lane.b32.xlu1 %v3767_v29, %s3954_s20  ;;  %758 = vrot.lane.b32.xlu0 %v3768_v37, %s3954_s20  ;;  %v834_v29 = vrot.slane %v832_v20, 1  ;;  %v823_v37 = vshrl.u32 %v3197_v10, 16 }
  0x4a   : > { %852 = vrot.lane.b32.xlu1 %v807_v42, %s3955_s21  ;;  %850 = vrot.lane.b32.xlu0 %v800_v43, %s3955_s21 }
  0x4e   : > { %856 = vrot.lane.b32.xlu1 %v821_v44, %s3955_s21  ;;  %854 = vrot.lane.b32.xlu0 %v814_v0, %s3955_s21  ;;  %v3804_v44 = vld [vmem:[%s4878_s3 + $0xc0] sm:$0xff]   ;;  %v835_v0 = vor.u32 %v834_v29, %v830_v28 }
  0x4f   : > { %3492 = vmatprep.subr.bf16.mxu0 %v3804_v44 }
  0x52   : > { %396 = vrot.lane.b32.xlu1 %v3769_v33, %s3948_s8  ;;  %394 = vrot.lane.b32.xlu0 %v3770_v40, %s3948_s8  ;;  %v844_v33 = vshrl.u32 %v3200_v17, 16  ;;  %v848_v40 = vrot.slane %v846_v31, 1 }
  0x56   : > { %400 = vrot.lane.b32.xlu1 %v3771_v1, %s3948_s8  ;;  %398 = vrot.lane.b32.xlu0 %v3772_v34, %s3948_s8  ;;  %v828_v1 = vor.u32 %v827_v38, %v823_v37  ;;  %v837_v34 = vshrl.u32 %v3199_v22, 16 }
  0x5a   : > { %508 = vrot.lane.b32.xlu1 %v483_v13, %s3950_s10  ;;  %506 = vrot.lane.b32.xlu0 %v476_v25, %s3950_s10  ;;  %v841_v13 = vrot.slane %v839_v39, 1 }
  0x5e   : > { %512 = vrot.lane.b32.xlu1 %v497_v35, %s3950_s10  ;;  %510 = vrot.lane.b32.xlu0 %v490_v36, %s3950_s10  ;;  %v849_v36 = vor.u32 %v848_v40, %v844_v33 }
  0x62   : > { %548 = vrot.lane.b32.xlu1 %v3158_v41, %s3949_s9  ;;  %546 = vrot.lane.b32.xlu0 %v3157_v45, %s3949_s9  ;;  %v842_v41 = vor.u32 %v841_v13, %v837_v34 }
  0x66   : > { %552 = vrot.lane.b32.xlu1 %v3160_v46, %s3949_s9  ;;  %550 = vrot.lane.b32.xlu0 %v3159_v47, %s3949_s9 }
  0x6a   : > { %588 = vrot.lane.b32.xlu1 %v3785_v50, %s3951_s11  ;;  %586 = vrot.lane.b32.xlu0 %v3786_v51, %s3951_s11 }
  0x6e   : > { %592 = vrot.lane.b32.xlu1 %v3787_v48, %s3951_s11  ;;  %590 = vrot.lane.b32.xlu0 %v3788_v52, %s3951_s11 }
  0x72   : > { %684 = vrot.lane.b32.xlu1 %v659_v49, %s3952_s12  ;;  %682 = vrot.lane.b32.xlu0 %v652_v56, %s3952_s12 }
  0x76   : > { %688 = vrot.lane.b32.xlu1 %v673_v59, %s3952_s12  ;;  %686 = vrot.lane.b32.xlu0 %v666_v60, %s3952_s12 }
  0x7a   : > { %724 = vrot.lane.b32.xlu1 %v3182_v63, %s3953_s13  ;;  %722 = vrot.lane.b32.xlu0 %v3181_v2, %s3953_s13 }
  0x7e   : > { %728 = vrot.lane.b32.xlu1 %v3184_v9, %s3953_s13  ;;  %726 = vrot.lane.b32.xlu0 %v3183_v14, %s3953_s13  ;;  %s3405_s13 = sshll.u32 %s4892_s25, 5 }
  0x7f   : > { %s283_s16 = scalar_lea.vmem %s4882_s7, %s3405_s13 }
  0x82   : > { %764 = vrot.lane.b32.xlu1 %v3797_v18, %s3954_s20  ;;  %762 = vrot.lane.b32.xlu0 %v3798_v24, %s3954_s20 }
  0x84   : > { %v4285_v42 = vpop.permute.xlu1 %390  ;;  %v387_v43 = vpop.permute.xlu0 %386 }
  0x85   : > { %v869_v5 = vsel %vm866_vm1, %v4026_v8, %v387_v43  ;;  %v875_v22 = vsel %vm866_vm1, %v4038_v16, %v4285_v42 }
  0x86   : > { %768 = vrot.lane.b32.xlu1 %v3799_v27, %s3954_s20  ;;  %766 = vrot.lane.b32.xlu0 %v3800_v32, %s3954_s20 }
  0x88   : > { %v393_v25 = vpop.permute.xlu1 %392  ;;  %v389_v35 = vpop.permute.xlu0 %388 }
  0x89   : > { %v872_v3 = vsel %vm866_vm1, %v4022_v6, %v389_v35  ;;  %v878_v8 = vsel %vm866_vm1, %v4031_v11, %v393_v25 }
  0x8a   : > { %860 = vrot.lane.b32.xlu1 %v835_v0, %s3955_s21  ;;  %858 = vrot.lane.b32.xlu0 %v828_v1, %s3955_s21 }
  0x8c   : > { %v541_v45 = vpop.permute.xlu1 %540  ;;  %v539_v46 = vpop.permute.xlu0 %538 }
  0x8e   : > { %864 = vrot.lane.b32.xlu1 %v849_v36, %s3955_s21  ;;  %862 = vrot.lane.b32.xlu0 %v842_v41, %s3955_s21 }
  0x90   : > { %v501_v47 = vpop.permute.xlu1 %500  ;;  %v499_v50 = vpop.permute.xlu0 %498 }
  0x91   : > { %v895_v7 = vsel %vm891_vm2, %v872_v3, %v501_v47  ;;  %v893_v10 = vsel %vm891_vm2, %v869_v5, %v499_v50 }
  0x92   : > { %v912_v12 = vsel %vm908_vm3, %v895_v7, %v541_v45  ;;  %v910_v6 = vsel %vm908_vm3, %v893_v10, %v539_v46  ;;  %v3805_v46 = vld [vmem:[%s4878_s3 + $0x80] sm:$0xff]  }
  0x94   : > { %v505_v51 = vpop.permute.xlu1 %504  ;;  %v503_v48 = vpop.permute.xlu0 %502 }
  0x95   : > { %v899_v24 = vsel %vm891_vm2, %v878_v8, %v505_v51  ;;  %v897_v28 = vsel %vm891_vm2, %v875_v22, %v503_v48 }
  0x98   : > { %v545_v52 = vpop.permute.xlu1 %544  ;;  %v543_v49 = vpop.permute.xlu0 %542 }
  0x99   : > { %v916_v29 = vsel %vm908_vm3, %v899_v24, %v545_v52  ;;  %v914_v37 = vsel %vm908_vm3, %v897_v28, %v543_v49 }
  0x9c   : > { %v581_v53 = vpop.permute.xlu1 %580  ;;  %v579_v55 = vpop.permute.xlu0 %578 }
  0x9d   : > { %v929_v15 = vsel %vm925_vm4, %v912_v12, %v581_v53  ;;  %v927_v18 = vsel %vm925_vm4, %v910_v6, %v579_v55 }
  0xa0   : > { %v585_v56 = vpop.permute.xlu1 %584  ;;  %v583_v57 = vpop.permute.xlu0 %582 }
  0xa1   : > { %v933_v38 = vsel %vm925_vm4, %v916_v29, %v585_v56  ;;  %v931_v43 = vsel %vm925_vm4, %v914_v37, %v583_v57 }
  0xa4   : > { %v677_v58 = vpop.permute.xlu1 %676  ;;  %v675_v59 = vpop.permute.xlu0 %674 }
  0xa5   : > { %v946_v20 = vsel %vm942_vm5, %v929_v15, %v677_v58  ;;  %v944_v26 = vsel %vm942_vm5, %v927_v18, %v675_v59 }
  0xa8   : > { %v681_v60 = vpop.permute.xlu1 %680  ;;  %v679_v61 = vpop.permute.xlu0 %678 }
  0xa9   : > { %v950_v44 = vsel %vm942_vm5, %v933_v38, %v681_v60  ;;  %v948_v33 = vsel %vm942_vm5, %v931_v43, %v679_v61 }
  0xac   : > { %v717_v62 = vpop.permute.xlu1 %716  ;;  %v715_v63 = vpop.permute.xlu0 %714 }
  0xad   : > { %v963_v27 = vsel %vm959_vm6, %v946_v20, %v717_v62  ;;  %v961_v11 = vsel %vm959_vm6, %v944_v26, %v715_v63 }
  0xb0   : > { %v721_v54 = vpop.permute.xlu1 %720  ;;  %v719_v2 = vpop.permute.xlu0 %718 }
  0xb1   : > { %v967_v40 = vsel %vm959_vm6, %v950_v44, %v721_v54  ;;  %v965_v34 = vsel %vm959_vm6, %v948_v33, %v719_v2 }
  0xb4   : > { %v757_v4 = vpop.permute.xlu1 %756  ;;  %v755_v9 = vpop.permute.xlu0 %754 }
  0xb5   : > { %v980_v31 = vsel %vm976_vm7, %v963_v27, %v757_v4  ;;  %v978_v16 = vsel %vm976_vm7, %v961_v11, %v755_v9 }
  0xb8   : > { %v761_v14 = vpop.permute.xlu1 %760  ;;  %v759_v17 = vpop.permute.xlu0 %758 }
  0xb9   : > { %v984_v13 = vsel %vm976_vm7, %v967_v40, %v761_v14  ;;  %v982_v35 = vsel %vm976_vm7, %v965_v34, %v759_v17 }
  0xbc   : > { %v853_v32 = vpop.permute.xlu1 %852  ;;  %v851_v42 = vpop.permute.xlu0 %850 }
  0xbd   : > { %v997_v39 = vsel %vm993_vm8, %v980_v31, %v853_v32  ;;  %v995_v0 = vsel %vm993_vm8, %v978_v16, %v851_v42 }
  0xbe   : > { %v3202_v1 = vcombine.low %v995_v0, %v997_v39 }
  0xc0   : > { %v857_v25 = vpop.permute.xlu1 %856  ;;  %3635 = vmatprep.mubr.msk.bf16.mxu0 %vm1057_vm9, %v3202_v1  ;;  %v855_v41 = vpop.permute.xlu0 %854 }
  0xc1   : > { %v1001_v36 = vsel %vm993_vm8, %v984_v13, %v857_v25  ;;  %v999_v45 = vsel %vm993_vm8, %v982_v35, %v855_v41 }
  0xc2   : > { %v3203_v47 = vcombine.low %v999_v45, %v1001_v36 }
  0xc4   : > { %v397_v50 = vpop.permute.xlu1 %396  ;;  %3636 = vmatmul.mubr.msk.bf16.vlgmr.msra.gmra.mrb[0].mxu0 %vm1057_vm9, %v3203_v47  ;;  %v395_v51 = vpop.permute.xlu0 %394 }
  0xc5   : > { %3493 = vmatpush3.bf16.msra.mxu0 %v3805_v46  ;;  %v884_v6 = vsel %vm866_vm1, %v4093_v19, %v397_v50  ;;  %v881_v17 = vsel %vm866_vm1, %v4097_v21, %v395_v51 }
  0xc8   : > { %v401_v48 = vpop.permute.xlu1 %400  ;;  %v399_v52 = vpop.permute.xlu0 %398 }
  0xc9   : > { %v890_v28 = vsel %vm866_vm1, %v4101_v23, %v401_v48  ;;  %v887_v21 = vsel %vm866_vm1, %v4114_v30, %v399_v52  ;;  %v3806_v48 = vld [vmem:[%s4878_s3 + $0xc8] sm:$0xff]   ;;  %v3807_v52 = vld [vmem:[%s4878_s3 + $0x40] sm:$0xff]  }
  0xca   : > { %3494 = vmatprep.subr.bf16.mxu0 %v3806_v48  ;;  %3452 = vmatprep.subr.bf16.mxu1 %v3807_v52  ;;  %v3852_v52 = vld [vmem:[%s4878_s3 + $0x1c0] sm:$0xff]  }
  0xcc   : > { %v509_v49 = vpop.permute.xlu1 %508  ;;  %v507_v53 = vpop.permute.xlu0 %506 }
  0xcd   : > { %v903_v8 = vsel %vm891_vm2, %v884_v6, %v509_v49  ;;  %v901_v18 = vsel %vm891_vm2, %v881_v17, %v507_v53  ;;  %v3808_v49 = vld [vmem:[%s4878_s3 + $0x88] sm:$0xff]   ;;  %v3809_v53 = vld [vmem:[%s4878_s3] sm:$0xff]  }
  0xce   : > { %3495 = vmatpush3.bf16.msra.mxu0 %v3808_v49  ;;  %3453 = vmatpush3.bf16.msra.mxu1 %v3809_v53  ;;  %v3813_v6 = vld [vmem:[%s4878_s3 + $0x8] sm:$0xff]   ;;  %v3854_v49 = vld [vmem:[%s4878_s3 + $0x140] sm:$0xff]  }
  0xcf   : > { %v4516_v53 = vld [vmem:[%s4877_s2] ss:$0 sm:$0xff] }
  0xd0   : > { %v513_v55 = vpop.permute.xlu1 %512  ;;  %v511_v56 = vpop.permute.xlu0 %510 }
  0xd1   : > { %v907_v11 = vsel %vm891_vm2, %v890_v28, %v513_v55  ;;  %v905_v37 = vsel %vm891_vm2, %v887_v21, %v511_v56  ;;  %v1166_v56 = vld [vmem:[#allocation2 + $0x18] sm:$0x1]  ;;  %v3823_v21 = vld [vmem:[%s4878_s3 + $0x60] sm:$0xff]   ;;  %vm4523_vm2 = vmand %vm1310_vm15, %vm1184_vm12 }
  0xd2   : > { %v3821_v28 = vld [vmem:[%s4878_s3 + $0x18] sm:$0xff]  }
  0xd4   : > { %v549_v57 = vpop.permute.xlu1 %548  ;;  %v547_v58 = vpop.permute.xlu0 %546 }
  0xd5   : > { %v920_v20 = vsel %vm908_vm3, %v903_v8, %v549_v57  ;;  %v918_v24 = vsel %vm908_vm3, %v901_v18, %v547_v58  ;;  %v1192_v57 = vld [vmem:[#allocation2 + $0x1c] sm:$0x1]  ;;  %v1167_v58 = vsel %vm4388_vm13, 0, %v1166_v56  ;;  %v3815_v18 = vld [vmem:[%s4878_s3 + $0x50] sm:$0xff]  }
  0xd6   : > { %1168 = vst [vmem:[#allocation2 + $0x18] sm:$0x1] %v1167_v58  ;;  %v3814_v8 = vld [vmem:[%s4878_s3 + $0xd8] sm:$0xff]  }
  0xd8   : > { %v553_v59 = vpop.permute.xlu1 %552  ;;  %v551_v60 = vpop.permute.xlu0 %550 }
  0xd9   : > { %v924_v38 = vsel %vm908_vm3, %v907_v11, %v553_v59  ;;  %v922_v42 = vsel %vm908_vm3, %v905_v37, %v551_v60  ;;  %v1160_v60 = vld [vmem:[#allocation2 + $0x8] sm:$0x1] }
  0xda   : > { %v3824_v11 = vld [vmem:[%s4878_s3 + $0xa8] sm:$0xff]  }
  0xdb   : > { %v3827_v37 = vld [vmem:[%s4878_s3 + $0x68] sm:$0xff]  }
  0xdc   : > { %v589_v61 = vpop.permute.xlu1 %588  ;;  %v587_v62 = vpop.permute.xlu0 %586 }
  0xdd   : > { %v937_v26 = vsel %vm925_vm4, %v920_v20, %v589_v61  ;;  %v935_v19 = vsel %vm925_vm4, %v918_v24, %v587_v62  ;;  %v1186_v61 = vld [vmem:[#allocation2 + $0xc] sm:$0x1]  ;;  %v1193_v62 = vsel %vm4395_vm14, 0, %v1192_v57  ;;  %v3816_v20 = vld [vmem:[%s4878_s3 + $0x98] sm:$0xff]   ;;  %v3818_v24 = vld [vmem:[%s4878_s3 + $0xe0] sm:$0xff]  }
  0xde   : > { %1194 = vst [vmem:[#allocation2 + $0x1c] sm:$0x1] %v1193_v62 }
  0xe0   : > { %v593_v63 = vpop.permute.xlu1 %592  ;;  %v591_v54 = vpop.permute.xlu0 %590 }
  0xe1   : > { %v941_v43 = vsel %vm925_vm4, %v924_v38, %v593_v63  ;;  %v939_v33 = vsel %vm925_vm4, %v922_v42, %v591_v54  ;;  %v1161_v63 = vsel %vm4388_vm13, 0, %v1160_v60  ;;  %v1187_v54 = vsel %vm4395_vm14, 0, %v1186_v61  ;;  %v3828_v38 = vld [vmem:[%s4878_s3 + $0xb0] sm:$0xff]   ;;  %v3832_v42 = vld [vmem:[%s4878_s3 + $0xb8] sm:$0xff]  }
  0xe2   : > { %1162 = vst [vmem:[#allocation2 + $0x8] sm:$0x1] %v1161_v63  ;;  %1188 = vst [vmem:[#allocation2 + $0xc] sm:$0x1] %v1187_v54 }
  0xe4   : > { %v685_v2 = vpop.permute.xlu1 %684  ;;  %v683_v3 = vpop.permute.xlu0 %682 }
  0xe5   : > { %v954_v29 = vsel %vm942_vm5, %v937_v26, %v685_v2  ;;  %v952_v31 = vsel %vm942_vm5, %v935_v19, %v683_v3  ;;  %v1169_v2 = vld [vmem:[#allocation2 + $0x20] sm:$0x1]  ;;  %v3810_v3 = vld [vmem:[%s4878_s3 + $0xd0] sm:$0xff]   ;;  %v3819_v26 = vld [vmem:[%s4878_s3 + $0x58] sm:$0xff]  }
  0xe6   : > { %3496 = vmatprep.subr.bf16.mxu0 %v3810_v3  ;;  %v3822_v19 = vld [vmem:[%s4878_s3 + $0xe8] sm:$0xff]  }
  0xe8   : > { %v689_v4 = vpop.permute.xlu1 %688  ;;  %v687_v5 = vpop.permute.xlu0 %686 }
  0xe9   : > { %v958_v40 = vsel %vm942_vm5, %v941_v43, %v689_v4  ;;  %v956_v34 = vsel %vm942_vm5, %v939_v33, %v687_v5  ;;  %v1170_v4 = vsel %vm4388_vm13, 0, %v1169_v2  ;;  %v1195_v5 = vld [vmem:[#allocation2 + $0x24] sm:$0x1]  ;;  %v3833_v43 = vld [vmem:[%s4878_s3 + $0x30] sm:$0xff]   ;;  %v1204_v33 = vld [vmem:[#allocation2 + $0x3c] sm:$0x1] }
  0xea   : > { %1171 = vst [vmem:[#allocation2 + $0x20] sm:$0x1] %v1170_v4 }
  0xec   : > { %v725_v7 = vpop.permute.xlu1 %724  ;;  %v723_v9 = vpop.permute.xlu0 %722 }
  0xed   : > { %v971_v32 = vsel %vm959_vm6, %v954_v29, %v725_v7  ;;  %v969_v16 = vsel %vm959_vm6, %v952_v31, %v723_v9  ;;  %v1163_v7 = vld [vmem:[#allocation2 + $0x10] sm:$0x1]  ;;  %v3811_v9 = vld [vmem:[%s4878_s3 + $0x48] sm:$0xff]   ;;  %v3956_v29 = vmov 0   ;;  %v3825_v31 = vld [vmem:[%s4878_s3 + $0x20] sm:$0xff]  }
  0xee   : > { %3454 = vmatprep.subr.bf16.mxu1 %v3811_v9  ;;  %1151 = vst [vmem:[#allocation2] sm:$0xf] %v3956_v29  ;;  %1152 = vst [vmem:[#allocation2 + $0x4] sm:$0x1] %v3956_v29 }
  0xef   : > { %3455 = vmatpush3.bf16.msra.mxu1 %v3813_v6  ;;  %1154 = vst [vmem:[#allocation2 + $0x48] sm:$0xf] %v3956_v29  ;;  %1155 = vst [vmem:[#allocation2 + $0x4c] sm:$0x1] %v3956_v29 }
  0xf0   : > { %v729_v10 = vpop.permute.xlu1 %728  ;;  %v727_v12 = vpop.permute.xlu0 %726  ;;  %3456 = vmatprep.subr.bf16.mxu1 %v3815_v18  ;;  %v1312_v18 = vld [vmem:[#allocation2 + $0x8] sm:$0xf] }
  0xf1   : > { %v975_v13 = vsel %vm959_vm6, %v958_v40, %v729_v10  ;;  %v973_v35 = vsel %vm959_vm6, %v956_v34, %v727_v12  ;;  %v1196_v10 = vsel %vm4395_vm14, 0, %v1195_v5  ;;  %v1164_v12 = vsel %vm4388_vm13, 0, %v1163_v7  ;;  %v1172_v34 = vld [vmem:[#allocation2 + $0x28] sm:$0x1] }
  0xf2   : > { %1197 = vst [vmem:[#allocation2 + $0x24] sm:$0x1] %v1196_v10  ;;  %1165 = vst [vmem:[#allocation2 + $0x10] sm:$0x1] %v1164_v12  ;;  %v1324_v12 = vld [vmem:[#allocation2 + $0x18] sm:$0xf] }
  0xf4   : > { %v765_v14 = vpop.permute.xlu1 %764  ;;  %v763_v15 = vpop.permute.xlu0 %762 }
  0xf5   : > { %v988_v23 = vsel %vm976_vm7, %v971_v32, %v765_v14  ;;  %v986_v30 = vsel %vm976_vm7, %v969_v16, %v763_v15  ;;  %v1189_v14 = vld [vmem:[#allocation2 + $0x14] sm:$0x1]  ;;  %v3829_v16 = vld [vmem:[%s4878_s3 + $0x28] sm:$0xff]  }
  0xf6   : > { %v3812_v15 = vld [vmem:[%s4878_s3 + $0x90] sm:$0xff]   ;;  %v1190_v17 = vsel %vm4395_vm14, 0, %v1189_v14  ;;  %v1327_v14 = vld [vmem:[#allocation2 + $0x1c] sm:$0x1] }
  0xf7   : > { %1191 = vst [vmem:[#allocation2 + $0x14] sm:$0x1] %v1190_v17  ;;  %3497 = vmatpush3.bf16.msra.mxu0 %v3812_v15  ;;  %v3826_v32 = vld [vmem:[%s4878_s3 + $0xf0] sm:$0xff]  }
  0xf8   : > { %v769_v22 = vpop.permute.xlu1 %768  ;;  %v767_v27 = vpop.permute.xlu0 %766  ;;  %3498 = vmatprep.subr.bf16.mxu0 %v3814_v8 }
  0xf9   : > { %v992_v36 = vsel %vm976_vm7, %v975_v13, %v769_v22  ;;  %v990_v45 = vsel %vm976_vm7, %v973_v35, %v767_v27  ;;  %v3817_v22 = vld [vmem:[%s4878_s3 + $0x10] sm:$0xff]   ;;  %v3820_v27 = vld [vmem:[%s4878_s3 + $0xa0] sm:$0xff]   ;;  %v1198_v13 = vld [vmem:[#allocation2 + $0x2c] sm:$0x1] }
  0xfa   : > { %3457 = vmatpush3.bf16.msra.mxu1 %v3817_v22  ;;  %v1199_v35 = vsel %vm4395_vm14, 0, %v1198_v13 }
  0xfb   : > { %3499 = vmatpush3.bf16.msra.mxu0 %v3816_v20  ;;  %3458 = vmatprep.subr.bf16.mxu1 %v3819_v26  ;;  %1200 = vst [vmem:[#allocation2 + $0x2c] sm:$0x1] %v1199_v35  ;;  %v1315_v20 = vld [vmem:[#allocation2 + $0xc] sm:$0x1] }
  0xfc   : > { %v861_v39 = vpop.permute.xlu1 %860  ;;  %v859_v0 = vpop.permute.xlu0 %858  ;;  %3500 = vmatprep.subr.bf16.mxu0 %v3818_v24 }
  0xfd   : > { %v1005_v44 = vsel %vm993_vm8, %v988_v23, %v861_v39  ;;  %v1003_v1 = vsel %vm993_vm8, %v986_v30, %v859_v0  ;;  %v3830_v23 = vld [vmem:[%s4878_s3 + $0xf8] sm:$0xff]   ;;  %v3831_v39 = vld [vmem:[%s4878_s3 + $0x70] sm:$0xff]  }
  0xfe   : > { %v3204_v25 = vcombine.low %v1003_v1, %v1005_v44  ;;  %3459 = vmatpush3.bf16.msra.mxu1 %v3821_v28  ;;  %v3839_v30 = vld [vmem:[%s4878_s3 + $0x78] sm:$0xff]   ;;  %v1205_v1 = vsel %vm4395_vm14, 0, %v1204_v33  ;;  %v1330_v28 = vld [vmem:[#allocation2 + $0x20] sm:$0xf]  ;;  %v1318_v33 = vld [vmem:[#allocation2 + $0x10] sm:$0xf] }
  0xff   : > { %3501 = vmatpush3.bf16.msra.mxu0 %v3820_v27  ;;  %3460 = vmatprep.subr.bf16.mxu1 %v3823_v21  ;;  %v3843_v44 = vld [vmem:[%s4878_s3 + $0x38] sm:$0xff]   ;;  %1206 = vst [vmem:[#allocation2 + $0x3c] sm:$0x1] %v1205_v1 }
 0x100   : > { %v865_v41 = vpop.permute.xlu1 %864  ;;  %3639 = vmatprep.mubr.msk.bf16.mxu0 %vm1057_vm9, %v3204_v25  ;;  %v863_v47 = vpop.permute.xlu0 %862  ;;  %3502 = vmatprep.subr.bf16.mxu0 %v3822_v19  ;;  %v1178_v0 = vld [vmem:[#allocation2 + $0x38] sm:$0x1]  ;;  %v1173_v25 = vsel %vm4388_vm13, 0, %v1172_v34  ;;  %v1333_v19 = vld [vmem:[#allocation2 + $0x24] sm:$0x1] }
 0x101   : > { %v1009_v46 = vsel %vm993_vm8, %v992_v36, %v865_v41  ;;  %v1007_v50 = vsel %vm993_vm8, %v990_v45, %v863_v47  ;;  %v1179_v40 = vsel %vm4388_vm13, 0, %v1178_v0  ;;  %v1181_v36 = vld [vmem:[#allocation2 + $0x40] sm:$0x1]  ;;  %1174 = vst [vmem:[#allocation2 + $0x28] sm:$0x1] %v1173_v25 }
 0x102   : > { %v3205_v51 = vcombine.low %v1007_v50, %v1009_v46  ;;  %3461 = vmatpush3.bf16.msra.mxu1 %v3825_v31  ;;  %1180 = vst [vmem:[#allocation2 + $0x38] sm:$0x1] %v1179_v40  ;;  %v1182_v41 = vsel %vm4388_vm13, 0, %v1181_v36  ;;  %v1207_v45 = vld [vmem:[#allocation2 + $0x44] sm:$0x1] }
 0x103   : > { %3503 = vmatpush3.bf16.msra.mxu0 %v3824_v11  ;;  %3462 = vmatprep.subr.bf16.mxu1 %v3827_v37  ;;  %v1175_v46 = vld [vmem:[#allocation2 + $0x30] sm:$0x1]  ;;  %1183 = vst [vmem:[#allocation2 + $0x40] sm:$0x1] %v1182_v41  ;;  %v1208_v47 = vsel %vm4395_vm14, 0, %v1207_v45 }
 0x104   : > { %3640 = vmatmul.mubr.msk.bf16.gmra.mrb[4].mxu0 %vm1057_vm9, %v3205_v51  ;;  %3504 = vmatprep.subr.bf16.mxu0 %v3826_v32  ;;  %v1176_v50 = vsel %vm4388_vm13, 0, %v1175_v46  ;;  %v1201_v51 = vld [vmem:[#allocation2 + $0x34] sm:$0x1]  ;;  %1209 = vst [vmem:[#allocation2 + $0x44] sm:$0x1] %v1208_v47 }
 0x105   : > { %1177 = vst [vmem:[#allocation2 + $0x30] sm:$0x1] %v1176_v50  ;;  %v1202_v48 = vsel %vm4395_vm14, 0, %v1201_v51  ;;  %v1368_v37 = vld [vmem:[#allocation2 + $0x4] sm:$0x1] }
 0x106   : > { %3463 = vmatpush3.bf16.msra.mxu1 %v3829_v16  ;;  %1203 = vst [vmem:[#allocation2 + $0x34] sm:$0x1] %v1202_v48  ;;  %v1321_v40 = vld [vmem:[#allocation2 + $0x14] sm:$0x1]  ;;  %v1376_v47 = vld [vmem:[#allocation2] sm:$0xe] }
 0x107   : > { %3505 = vmatpush3.bf16.msra.mxu0 %v3828_v38  ;;  %3464 = vmatprep.subr.bf16.mxu1 %v3831_v39  ;;  %v3229_v50 = vcombine.low %v1376_v47, %v1368_v37 }
 0x108   : > { %3506 = vmatprep.subr.bf16.mxu0 %v3830_v23 }
 0x10a   : > { %3465 = vmatpush3.bf16.msra.mxu1 %v3833_v43 }
 0x10b   : > { %3507 = vmatpush3.bf16.msra.mxu0 %v3832_v42  ;;  %3466 = vmatprep.subr.bf16.mxu1 %v3839_v30  ;;  %v4527_v42 = vld [vmem:[#allocation2] sm:$0xf] }
 0x10c   : > { %3572 = vmatprep.subr.bf16.mxu0 %v3852_v52  ;;  %v3221_v41 = vcombine.low %v4527_v42, %v1368_v37 }
 0x10e   : > { %3467 = vmatpush3.bf16.msra.mxu1 %v3843_v44  ;;  %v1476_v51 = vshll.u32 %v3221_v41, 16 }
 0x10f   : > { %3532 = vmatprep.subr.bf16.mxu1 %v3854_v49 }
 0x197   : > { %v3637_v56 = vpop.f32.mrb[0].mxu0 }
 0x198   : > { %v1117_v57 = vadd.f32 %v3637_v56, %v4516_v53  ;;  %v1108_v58 = vpop.f32.mrb[1].mxu0 }
 0x199   : > { %v1109_v59 = vadd.f32 %v4516_v53, %v1108_v58  ;;  %v3638_v60 = vpop.f32.mrb[2].mxu0  ;;  %v1474_v58 = vshrl.u32 %v3221_v41, 16 }
 0x19a   : > { %v1141_v61 = vmax.f32 %v1117_v57, 0.0  ;;  %v1120_v62 = vadd.f32 %v3638_v60, %v4516_v53  ;;  %v1111_v63 = vpop.f32.mrb[3].mxu0  ;;  %v1553_v57 = vrot.slane %v3229_v50, 1 }
 0x19b   : > { %v1139_v54 = vmax.f32 %v1109_v59, 0.0  ;;  %v1112_v2 = vadd.f32 %v4516_v53, %v1111_v63  ;;  %v1478_v59 = vrot.slane %v1476_v51, 1 }
 0x19c   : > { %v3408_v3 = vpack.c.bf16 %v1141_v61, %v1141_v61  ;;  %v1142_v4 = vmax.f32 %v1120_v62, 0.0 }
 0x19d   : > { %v3406_v5 = vpack.c.bf16 %v1139_v54, %v1139_v54  ;;  %v1140_v7 = vmax.f32 %v1112_v2, 0.0 }
 0x19e   : > { %v1247_v9 = vshrl.u32 %v3408_v3, 16  ;;  %v3409_v10 = vpack.c.bf16 %v1142_v4, %v1142_v4  ;;  %v1250_v8 = vshll.u32 %v3408_v3, 16 }
 0x19f   : > { %v1231_v15 = vshrl.u32 %v3406_v5, 16  ;;  %v3407_v6 = vpack.c.bf16 %v1140_v7, %v1140_v7  ;;  %v1234_v27 = vshll.u32 %v3406_v5, 16 }
 0x1a0   : > { %v1249_v17 = vrot.slane %v1247_v9, 7  ;;  %v1255_v22 = vshrl.u32 %v3409_v10, 16  ;;  %v1258_v32 = vshll.u32 %v3409_v10, 16 }
 0x1a1   : > { %v1233_v26 = vrot.slane %v1231_v15, 7  ;;  %v1239_v29 = vshrl.u32 %v3407_v6, 16  ;;  %v1242_v39 = vshll.u32 %v3407_v6, 16 }
 0x1a2   : > { %v1252_v21 = vor.u32 %v1250_v8, %v1249_v17  ;;  %v1253_v11 = vrot.slane %v1249_v17, 4  ;;  %v1257_v31 = vrot.slane %v1255_v22, 7  ;;  %v3853_v8 = vld [vmem:[%s4878_s3 + $0x180] sm:$0xff]  }
 0x1a3   : > { %v1236_v38 = vor.u32 %v1234_v27, %v1233_v26  ;;  %v1237_v16 = vrot.slane %v1233_v26, 4  ;;  %v1241_v23 = vrot.slane %v1239_v29, 7 }
 0x1a4   : > { %v1325_v43 = vsel %vm4523_vm2, %v1252_v21, %v1324_v12  ;;  %v1328_v30 = vsel %vm4388_vm13, %v1253_v11, %v1327_v14  ;;  %v1260_v44 = vor.u32 %v1258_v32, %v1257_v31  ;;  %v1261_v0 = vrot.slane %v1257_v31, 4 }
 0x1a5   : > { %1326 = vst [vmem:[#allocation2 + $0x18] sm:$0xf] %v1325_v43  ;;  %1329 = vst [vmem:[#allocation2 + $0x1c] sm:$0x1] %v1328_v30  ;;  %v1313_v1 = vsel %vm4523_vm2, %v1236_v38, %v1312_v18  ;;  %v1316_v34 = vsel %vm4388_vm13, %v1237_v16, %v1315_v20  ;;  %v1244_v13 = vor.u32 %v1242_v39, %v1241_v23  ;;  %v1245_v25 = vrot.slane %v1241_v23, 4 }
 0x1a6   : > { %1314 = vst [vmem:[#allocation2 + $0x8] sm:$0xf] %v1313_v1  ;;  %1317 = vst [vmem:[#allocation2 + $0xc] sm:$0x1] %v1316_v34  ;;  %v1331_v35 = vsel %vm4523_vm2, %v1260_v44, %v1330_v28  ;;  %v1334_v36 = vsel %vm4388_vm13, %v1261_v0, %v1333_v19  ;;  %v3855_v28 = vld [vmem:[%s4878_s3 + $0x1c8] sm:$0xff]   ;;  %v1479_v21 = vor.u32 %v1478_v59, %v1474_v58 }
 0x1a7   : > { %1332 = vst [vmem:[#allocation2 + $0x20] sm:$0xf] %v1331_v35  ;;  %1335 = vst [vmem:[#allocation2 + $0x24] sm:$0x1] %v1334_v36  ;;  %v1319_v45 = vsel %vm4523_vm2, %v1244_v13, %v1318_v33  ;;  %v1322_v46 = vsel %vm4388_vm13, %v1245_v25, %v1321_v40  ;;  %v3857_v44 = vld [vmem:[%s4878_s3 + $0x188] sm:$0xff]   ;;  %v3859_v13 = vld [vmem:[%s4878_s3 + $0x1d0] sm:$0xff]  }
 0x1a8   : > { %1320 = vst [vmem:[#allocation2 + $0x10] sm:$0xf] %v1319_v45  ;;  %1323 = vst [vmem:[#allocation2 + $0x14] sm:$0x1] %v1322_v46 }
 0x1ac   : > { %v4550_v63 = vld [vmem:[#allocation2 + $0x18] sm:$0xf]  ;;  %v1371_v14 = vld [vmem:[#allocation2 + $0x1c] sm:$0x1] }
 0x1ad   : > { %v1384_v48 = vld [vmem:[#allocation2 + $0x8] sm:$0xf]  ;;  %v4546_v52 = vld [vmem:[#allocation2 + $0xc] sm:$0x1]  ;;  %v1386_v20 = vld [vmem:[#allocation2 + $0x18] sm:$0xf]  ;;  %v3224_v26 = vcombine.low %v4550_v63, %v1371_v14 }
 0x1ae   : > { %v1369_v49 = vld [vmem:[#allocation2 + $0xc] sm:$0x1]  ;;  %v1377_v56 = vld [vmem:[#allocation2 + $0x8] sm:$0xe]  ;;  %v4553_v54 = vcombine.low %v1384_v48, %v4546_v52  ;;  %v1387_v4 = vld [vmem:[#allocation2 + $0x20] sm:$0xf] }
 0x1af   : > { %v1385_v60 = vld [vmem:[#allocation2 + $0x10] sm:$0xf]  ;;  %v4548_v61 = vld [vmem:[#allocation2 + $0x14] sm:$0x1]  ;;  %v3230_v62 = vcombine.low %v1377_v56, %v1369_v49  ;;  %v1361_v5 = vld [vmem:[#allocation2 + $0x8] sm:$0xf]  ;;  %v3282_v29 = vcombine.low %v1386_v20, %v1387_v4 }
 0x1b0   : > { %v3238_v2 = vcombine.low %v1385_v60, %v4548_v61  ;;  %v3273_v3 = vcombine.low %v1384_v48, %v1385_v60  ;;  %v4556_v7 = vld [vmem:[#allocation2 + $0x10] sm:$0xf]  ;;  %v3222_v10 = vcombine.low %v1361_v5, %v1369_v49  ;;  %v1370_v12 = vld [vmem:[#allocation2 + $0x14] sm:$0x1]  ;;  %v1379_v27 = vld [vmem:[#allocation2 + $0x18] sm:$0xe]  ;;  %v3270_v49 = vcombine.low %v4527_v42, %v1361_v5 }
 0x1b1   : > { %v1554_v9 = vrot.slane %v3230_v62, 1  ;;  %v3223_v6 = vcombine.low %v4556_v7, %v1370_v12  ;;  %v1378_v17 = vld [vmem:[#allocation2 + $0x10] sm:$0xe]  ;;  %v1604_v19 = vshll.u32 %v4553_v54, 16  ;;  %v1497_v37 = vshll.u32 %v3224_v26, 16  ;;  %v3856_v56 = vld [vmem:[%s4878_s3 + $0x100] sm:$0xff]  }
 0x1b2   : > { %v1611_v15 = vshll.u32 %v3238_v2, 16  ;;  %2617 = vmatprep.mubr.bf16.mxu0 %v3273_v3  ;;  %v1483_v22 = vshll.u32 %v3222_v10, 16  ;;  %v1481_v31 = vshrl.u32 %v3222_v10, 16  ;;  %v3231_v38 = vcombine.low %v1378_v17, %v1370_v12  ;;  %v4567_v23 = vld [vmem:[#allocation2 + $0x1c] sm:$0x1]  ;;  %v3858_v60 = vld [vmem:[%s4878_s3 + $0x148] sm:$0xff]  }
 0x1b3   : > { %v3272_v18 = vcombine.low %v1553_v57, %v1554_v9  ;;  %v1490_v11 = vshll.u32 %v3223_v6, 16  ;;  %v1488_v39 = vshrl.u32 %v3223_v6, 16  ;;  %v3232_v30 = vcombine.low %v1379_v27, %v1371_v14  ;;  %v4572_v0 = vld [vmem:[#allocation2 + $0x24] sm:$0x1]  ;;  %v3861_v57 = vld [vmem:[%s4878_s3 + $0x190] sm:$0xff]   ;;  %v3863_v42 = vld [vmem:[%s4878_s3 + $0x1d8] sm:$0xff]  }
 0x1b4   : > { %v1485_v32 = vrot.slane %v1483_v22, 1  ;;  %v1613_v16 = vrot.slane %v1611_v15, 1  ;;  %v1495_v40 = vshrl.u32 %v3224_v26, 16  ;;  %v1499_v1 = vrot.slane %v1497_v37, 1  ;;  %v3860_v3 = vld [vmem:[%s4878_s3 + $0x108] sm:$0xff]   ;;  %v3862_v9 = vld [vmem:[%s4878_s3 + $0x150] sm:$0xff]  }
 0x1b5   : > { %2618 = vmatmul.mubr.bf16.vlgmr.msra.gmra.mrb[8].mxu0 %v3272_v18  ;;  %v1492_v43 = vrot.slane %v1490_v11, 1  ;;  %v1555_v34 = vrot.slane %v3231_v38, 1  ;;  %v1606_v25 = vrot.slane %v1604_v19, 1  ;;  %v1609_v35 = vshrl.u32 %v3238_v2, 16  ;;  %v3874_v10 = vld [vmem:[%s4878_s3 + $0x1e0] sm:$0xff]   ;;  %v3864_v15 = vld [vmem:[%s4878_s3 + $0x110] sm:$0xff]  }
 0x1b6   : > { %2625 = vmatprep.mubr.bf16.mxu0 %v3282_v29  ;;  %3573 = vmatpush3.bf16.msra.mxu0 %v3853_v8  ;;  %v1486_v33 = vor.u32 %v1485_v32, %v1481_v31  ;;  %v3239_v41 = vcombine.low %v1386_v20, %v4567_v23  ;;  %v1500_v46 = vor.u32 %v1499_v1, %v1495_v40  ;;  %v1556_v47 = vrot.slane %v3232_v30, 1  ;;  %v3879_v6 = vld [vmem:[%s4878_s3 + $0x1a0] sm:$0xff]   ;;  %v3873_v20 = vld [vmem:[%s4878_s3 + $0x158] sm:$0xff]   ;;  %v3884_v27 = vld [vmem:[%s4878_s3 + $0x1a8] sm:$0xff]  }
 0x1b7   : > { %3574 = vmatprep.subr.bf16.mxu0 %v3855_v28  ;;  %v1493_v36 = vor.u32 %v1492_v43, %v1488_v39  ;;  %v1602_v50 = vshrl.u32 %v4553_v54, 16  ;;  %v4579_v51 = vor.u32 %v1613_v16, %v1609_v35  ;;  %v3240_v48 = vcombine.low %v1387_v4, %v4572_v0  ;;  %v3865_v4 = vld [vmem:[%s4878_s3 + $0x198] sm:$0xff]   ;;  %v3880_v19 = vld [vmem:[%s4878_s3 + $0x160] sm:$0xff]   ;;  %v3890_v29 = vld [vmem:[%s4878_s3 + $0x1f0] sm:$0xff]  }
 0x1b8   : > { %v3271_v45 = vcombine.low %v1479_v21, %v1486_v33  ;;  %v3281_v59 = vcombine.low %v1555_v34, %v1556_v47  ;;  %v1618_v54 = vshll.u32 %v3239_v41, 16  ;;  %v3279_v14 = vcombine.low %v4556_v7, %v4550_v63  ;;  %v3881_v63 = vld [vmem:[%s4878_s3 + $0x1e8] sm:$0xff]   ;;  %v3878_v26 = vld [vmem:[%s4878_s3 + $0x118] sm:$0xff]   ;;  %v3883_v21 = vld [vmem:[%s4878_s3 + $0x120] sm:$0xff]  }
 0x1b9   : > { %v3280_v58 = vcombine.low %v1493_v36, %v1500_v46  ;;  %v4595_v62 = vor.u32 %v1606_v25, %v1602_v50  ;;  %v1625_v2 = vshll.u32 %v3240_v48, 16  ;;  %v1616_v17 = vshrl.u32 %v3239_v41, 16  ;;  %v3892_v11 = vld [vmem:[%s4878_s3 + $0x1b0] sm:$0xff]   ;;  %v3889_v31 = vld [vmem:[%s4878_s3 + $0x168] sm:$0xff]   ;;  %v3896_v32 = vld [vmem:[%s4878_s3 + $0x1f8] sm:$0xff]  }
 0x1ba   : > { %3575 = vmatpush3.bf16.msra.mxu0 %v3857_v44  ;;  %2552 = vmatprep.mubr.bf16.mxu1 %v3271_v45  ;;  %v1620_v12 = vrot.slane %v1618_v54, 1  ;;  %v1623_v8 = vshrl.u32 %v3240_v48, 16  ;;  %v3891_v37 = vld [vmem:[%s4878_s3 + $0x128] sm:$0xff]   ;;  %v3899_v38 = vld [vmem:[%s4878_s3 + $0x1b8] sm:$0xff]   ;;  %v3895_v16 = vld [vmem:[%s4878_s3 + $0x170] sm:$0xff]  }
 0x1bb   : > { %3576 = vmatprep.subr.bf16.mxu0 %v3859_v13  ;;  %2553 = vmatmul.mubr.bf16.vlgmr.msra.gmra.mrb[0].mxu1 %v3270_v49  ;;  %v3274_v5 = vcombine.low %v4595_v62, %v4579_v51  ;;  %v1627_v18 = vrot.slane %v1625_v2, 1  ;;  %v4667_v39 = vld [vmem:[%s4878_s3 + $0x200] sm:$0xff]   ;;  %v3898_v43 = vld [vmem:[%s4878_s3 + $0x130] sm:$0xff]   ;;  %v3902_v30 = vld [vmem:[%s4878_s3 + $0x178] sm:$0xff]  }
 0x1bc   : > { %2560 = vmatprep.mubr.bf16.mxu1 %v3280_v58  ;;  %3533 = vmatpush3.bf16.msra.mxu1 %v3856_v56  ;;  %v4625_v7 = vor.u32 %v1620_v12, %v1616_v17  ;;  %v3905_v44 = vld [vmem:[%s4878_s3 + $0x138] sm:$0xff]   ;;  %v1336_v2 = vld [vmem:[#allocation2 + $0x28] sm:$0xf]  ;;  %v1357_v12 = vld [vmem:[#allocation2 + $0x44] sm:$0x1] }
 0x1bd   : > { %2626 = vmatmul.mubr.bf16.gmra.mrb[12].mxu0 %v3281_v59  ;;  %3534 = vmatprep.subr.bf16.mxu1 %v3858_v60  ;;  %v4627_v22 = vor.u32 %v1627_v18, %v1623_v8  ;;  %v1351_v58 = vld [vmem:[#allocation2 + $0x3c] sm:$0x1]  ;;  %v4684_v18 = vld [vmem:[#allocation2 + $0x20] sm:$0xf] }
 0x1be   : > { %3577 = vmatpush3.bf16.msra.mxu0 %v3861_v57  ;;  %v1348_v57 = vld [vmem:[#allocation2 + $0x38] sm:$0xf] }
 0x1bf   : > { %3578 = vmatprep.subr.bf16.mxu0 %v3863_v42  ;;  %v3283_v28 = vcombine.low %v4625_v7, %v4627_v22 }
 0x1c0   : > { %3535 = vmatpush3.bf16.msra.mxu1 %v3860_v3  ;;  %v1339_v3 = vld [vmem:[#allocation2 + $0x2c] sm:$0x1] }
 0x1c1   : > { %3536 = vmatprep.subr.bf16.mxu1 %v3862_v9 }
 0x1c2   : > { %3579 = vmatpush3.bf16.msra.mxu0 %v3865_v4 }
 0x1c3   : > { %3580 = vmatprep.subr.bf16.mxu0 %v3874_v10  ;;  %2561 = vmatmul.mubr.bf16.gmra.mrb[4].mxu1 %v3279_v14 }
 0x1c4   : > { %3537 = vmatpush3.bf16.msra.mxu1 %v3864_v15 }
 0x1c5   : > { %3538 = vmatprep.subr.bf16.mxu1 %v3873_v20 }
 0x1c6   : > { %3581 = vmatpush3.bf16.msra.mxu0 %v3879_v6 }
 0x1c7   : > { %3582 = vmatprep.subr.bf16.mxu0 %v3881_v63 }
 0x1c8   : > { %3539 = vmatpush3.bf16.msra.mxu1 %v3878_v26 }
 0x1c9   : > { %3540 = vmatprep.subr.bf16.mxu1 %v3880_v19  ;;  %v1372_v19 = vld [vmem:[#allocation2 + $0x24] sm:$0x1] }
 0x1ca   : > { %3583 = vmatpush3.bf16.msra.mxu0 %v3884_v27 }
 0x1cb   : > { %3584 = vmatprep.subr.bf16.mxu0 %v3890_v29 }
 0x1cc   : > { %3541 = vmatpush3.bf16.msra.mxu1 %v3883_v21 }
 0x1cd   : > { %3542 = vmatprep.subr.bf16.mxu1 %v3889_v31 }
 0x1ce   : > { %3585 = vmatpush3.bf16.msra.mxu0 %v3892_v11 }
 0x1cf   : > { %3586 = vmatprep.subr.bf16.mxu0 %v3896_v32  ;;  %v1342_v32 = vld [vmem:[#allocation2 + $0x30] sm:$0xf] }
 0x1d0   : > { %3543 = vmatpush3.bf16.msra.mxu1 %v3891_v37  ;;  %v1345_v37 = vld [vmem:[#allocation2 + $0x34] sm:$0x1] }
 0x1d1   : > { %3544 = vmatprep.subr.bf16.mxu1 %v3895_v16 }
 0x1d2   : > { %3587 = vmatpush3.bf16.msra.mxu0 %v3899_v38 }
 0x1d3   : > { %3643 = vmatprep.subr.bf16.mxu0 %v4667_v39 }
 0x1d4   : > { %3545 = vmatpush3.bf16.msra.mxu1 %v3898_v43 }
 0x1d5   : > { %3546 = vmatprep.subr.bf16.mxu1 %v3902_v30 }
 0x1d7   : > { %v3641_v33 = vpop.f32.mrb[4].mxu0 }
 0x1d8   : > { %v1133_v40 = vadd.f32 %v3641_v33, %v4516_v53  ;;  %v1124_v1 = vpop.f32.mrb[5].mxu0  ;;  %3547 = vmatpush3.bf16.msra.mxu1 %v3905_v44  ;;  %v4694_v44 = vld [vmem:[#allocation2 + $0x10] sm:$0xf]  ;;  %v4696_v33 = vld [vmem:[#allocation2 + $0x14] sm:$0x1] }
 0x1d9   : > { %v1125_v34 = vadd.f32 %v4516_v53, %v1124_v1  ;;  %v3642_v13 = vpop.f32.mrb[6].mxu0  ;;  %3677 = vmatprep.subr.bf16.mxu1 %v4667_v39 }
 0x1da   : > { %v1145_v25 = vmax.f32 %v1133_v40, 0.0  ;;  %v1136_v35 = vadd.f32 %v3642_v13, %v4516_v53  ;;  %v1127_v36 = vpop.f32.mrb[7].mxu0  ;;  %v3225_v13 = vcombine.low %v4684_v18, %v1372_v19 }
 0x1db   : > { %v1143_v41 = vmax.f32 %v1125_v34, 0.0  ;;  %v1128_v45 = vadd.f32 %v4516_v53, %v1127_v36  ;;  %v1354_v53 = vld [vmem:[#allocation2 + $0x40] sm:$0xf]  ;;  %v3253_v36 = vcombine.low %v4694_v44, %v4696_v33 }
 0x1dc   : > { %v3412_v46 = vpack.c.bf16 %v1145_v25, %v1145_v25  ;;  %v1146_v47 = vmax.f32 %v1136_v35, 0.0  ;;  %v1380_v34 = vld [vmem:[#allocation2 + $0x20] sm:$0xe] }
 0x1dd   : > { %v3410_v50 = vpack.c.bf16 %v1143_v41, %v1143_v41  ;;  %v1144_v48 = vmax.f32 %v1128_v45, 0.0  ;;  %v3233_v41 = vcombine.low %v1380_v34, %v1372_v19  ;;  %v4709_v45 = vld [vmem:[#allocation2 + $0x18] sm:$0xf]  ;;  %v1732_v24 = vshll.u32 %v3253_v36, 16 }
 0x1de   : > { %v1279_v49 = vshrl.u32 %v3412_v46, 16  ;;  %v3413_v56 = vpack.c.bf16 %v1146_v47, %v1146_v47  ;;  %v1282_v54 = vshll.u32 %v3412_v46, 16  ;;  %v4711_v46 = vld [vmem:[#allocation2 + $0x1c] sm:$0x1]  ;;  %v1504_v47 = vshll.u32 %v3225_v13, 16 }
 0x1df   : > { %v1263_v59 = vshrl.u32 %v3410_v50, 16  ;;  %v3411_v60 = vpack.c.bf16 %v1144_v48, %v1144_v48  ;;  %v1266_v10 = vshll.u32 %v3410_v50, 16  ;;  %v4715_v50 = vcombine.low %v4709_v45, %v4711_v46 }
 0x1e0   : > { %v1281_v42 = vrot.slane %v1279_v49, 7  ;;  %v1287_v4 = vshrl.u32 %v3413_v56, 16  ;;  %v1290_v8 = vshll.u32 %v3413_v56, 16  ;;  %v1557_v55 = vrot.slane %v3233_v41, 1 }
 0x1e1   : > { %v1265_v9 = vrot.slane %v1263_v59, 7  ;;  %v1271_v14 = vshrl.u32 %v3411_v60, 16  ;;  %v1274_v27 = vshll.u32 %v3411_v60, 16  ;;  %v1502_v49 = vshrl.u32 %v3225_v13, 16 }
 0x1e2   : > { %v1284_v15 = vor.u32 %v1282_v54, %v1281_v42  ;;  %v1285_v6 = vrot.slane %v1281_v42, 4  ;;  %v1289_v17 = vrot.slane %v1287_v4, 7  ;;  %v1730_v59 = vshrl.u32 %v3253_v36, 16  ;;  %v4726_v4 = vld [vmem:[#allocation2 + $0x20] sm:$0xf] }
 0x1e3   : > { %v1268_v20 = vor.u32 %v1266_v10, %v1265_v9  ;;  %v1269_v63 = vrot.slane %v1265_v9, 4  ;;  %v1273_v26 = vrot.slane %v1271_v14, 7  ;;  %v4728_v9 = vld [vmem:[#allocation2 + $0x24] sm:$0x1]  ;;  %v1734_v14 = vrot.slane %v1732_v24, 1 }
 0x1e4   : > { %v1349_v29 = vsel %vm4523_vm2, %v1284_v15, %v1348_v57  ;;  %v1352_v21 = vsel %vm4388_vm13, %v1285_v6, %v1351_v58  ;;  %v1292_v11 = vor.u32 %v1290_v8, %v1289_v17  ;;  %v1293_v31 = vrot.slane %v1289_v17, 4  ;;  %v1401_v24 = vld [vmem:[#allocation2 + $0x10] sm:$0xe] }
 0x1e5   : > { %1350 = vst [vmem:[#allocation2 + $0x38] sm:$0xf] %v1349_v29  ;;  %1353 = vst [vmem:[#allocation2 + $0x3c] sm:$0x1] %v1352_v21  ;;  %v1337_v38 = vsel %vm4523_vm2, %v1268_v20, %v1336_v2  ;;  %v1340_v16 = vsel %vm4388_vm13, %v1269_v63, %v1339_v3  ;;  %v1276_v43 = vor.u32 %v1274_v27, %v1273_v26  ;;  %v1277_v30 = vrot.slane %v1273_v26, 4 }
 0x1e6   : > { %1338 = vst [vmem:[#allocation2 + $0x28] sm:$0xf] %v1337_v38  ;;  %1341 = vst [vmem:[#allocation2 + $0x2c] sm:$0x1] %v1340_v16  ;;  %v1355_v40 = vsel %vm4523_vm2, %v1292_v11, %v1354_v53  ;;  %v1358_v1 = vsel %vm4388_vm13, %v1293_v31, %v1357_v12  ;;  %v1506_v58 = vrot.slane %v1504_v47, 1  ;;  %v1739_v15 = vshll.u32 %v4715_v50, 16 }
 0x1e7   : > { %1356 = vst [vmem:[#allocation2 + $0x40] sm:$0xf] %v1355_v40  ;;  %1359 = vst [vmem:[#allocation2 + $0x44] sm:$0x1] %v1358_v1  ;;  %v1343_v25 = vsel %vm4523_vm2, %v1276_v43, %v1342_v32  ;;  %v1346_v35 = vsel %vm4388_vm13, %v1277_v30, %v1345_v37  ;;  %v3255_v1 = vcombine.low %v4726_v4, %v4728_v9 }
 0x1e8   : > { %1344 = vst [vmem:[#allocation2 + $0x30] sm:$0xf] %v1343_v25  ;;  %1347 = vst [vmem:[#allocation2 + $0x34] sm:$0x1] %v1346_v35  ;;  %v1507_v26 = vor.u32 %v1506_v58, %v1502_v49  ;;  %v1741_v35 = vrot.slane %v1739_v15, 1  ;;  %v1737_v58 = vshrl.u32 %v4715_v50, 16 }
 0x1ec   : > { %v4724_v3 = vld [vmem:[#allocation2 + $0x38] sm:$0xf]  ;;  %v1375_v20 = vld [vmem:[#allocation2 + $0x3c] sm:$0x1] }
 0x1ed   : > { %v4717_v48 = vld [vmem:[#allocation2 + $0x28] sm:$0xf]  ;;  %v1373_v56 = vld [vmem:[#allocation2 + $0x2c] sm:$0x1]  ;;  %v4737_v63 = vld [vmem:[#allocation2 + $0x38] sm:$0xf]  ;;  %v3228_v19 = vcombine.low %v4724_v3, %v1375_v20 }
 0x1ee   : > { %v1381_v57 = vld [vmem:[#allocation2 + $0x28] sm:$0xe]  ;;  %v3226_v54 = vcombine.low %v4717_v48, %v1373_v56  ;;  %v4735_v17 = vld [vmem:[#allocation2 + $0x40] sm:$0xf]  ;;  %v1383_v21 = vld [vmem:[#allocation2 + $0x38] sm:$0xe] }
 0x1ef   : > { %v4719_v60 = vld [vmem:[#allocation2 + $0x28] sm:$0xf]  ;;  %v4721_v42 = vld [vmem:[#allocation2 + $0x30] sm:$0xf]  ;;  %v3234_v2 = vcombine.low %v1381_v57, %v1373_v56  ;;  %v1374_v12 = vld [vmem:[#allocation2 + $0x34] sm:$0x1]  ;;  %v3300_v43 = vcombine.low %v4737_v63, %v4735_v17  ;;  %v3236_v25 = vcombine.low %v1383_v21, %v1375_v20  ;;  %v1735_v57 = vor.u32 %v1734_v14, %v1730_v59 }
 0x1f0   : > { %v3291_v10 = vcombine.low %v4719_v60, %v4721_v42  ;;  %v4732_v53 = vld [vmem:[#allocation2 + $0x30] sm:$0xf]  ;;  %v1511_v8 = vshll.u32 %v3226_v54, 16  ;;  %v1509_v31 = vshrl.u32 %v3226_v54, 16  ;;  %v4741_v38 = vld [vmem:[#allocation2 + $0x28] sm:$0xf]  ;;  %v3288_v54 = vcombine.low %v4684_v18, %v4717_v48 }
 0x1f1   : > { %v1558_v6 = vrot.slane %v3234_v2, 1  ;;  %v3227_v27 = vcombine.low %v4732_v53, %v1374_v12  ;;  %v1382_v29 = vld [vmem:[#allocation2 + $0x30] sm:$0xe]  ;;  %v4743_v16 = vld [vmem:[#allocation2 + $0x2c] sm:$0x1]  ;;  %v1525_v40 = vshll.u32 %v3228_v19, 16  ;;  %v1742_v59 = vor.u32 %v1741_v35, %v1737_v58 }
 0x1f2   : > { %2633 = vmatprep.mubr.bf16.mxu0 %v3291_v10  ;;  %v1513_v32 = vrot.slane %v1511_v8, 1  ;;  %v3235_v37 = vcombine.low %v1382_v29, %v1374_v12  ;;  %v1523_v41 = vshrl.u32 %v3228_v19, 16  ;;  %v1400_v12 = vld [vmem:[#allocation2 + $0x8] sm:$0xe]  ;;  %v3246_v8 = vcombine.low %v1401_v24, %v4548_v61  ;;  %v4755_v20 = vld [vmem:[#allocation2 + $0x30] sm:$0xf] }
 0x1f3   : > { %v3290_v11 = vcombine.low %v1557_v55, %v1558_v6  ;;  %v1518_v30 = vshll.u32 %v3227_v27, 16  ;;  %v1516_v13 = vshrl.u32 %v3227_v27, 16  ;;  %v1527_v47 = vrot.slane %v1525_v40, 1  ;;  %v4757_v27 = vld [vmem:[#allocation2 + $0x34] sm:$0x1] }
 0x1f4   : > { %v1514_v34 = vor.u32 %v1513_v32, %v1509_v31  ;;  %v3256_v55 = vcombine.low %v4741_v38, %v4743_v16  ;;  %v1559_v56 = vrot.slane %v3235_v37, 1  ;;  %v1560_v6 = vrot.slane %v3236_v25, 1  ;;  %v4760_v18 = vld [vmem:[#allocation2 + $0x38] sm:$0xf]  ;;  %v4762_v48 = vld [vmem:[#allocation2 + $0x3c] sm:$0x1] }
 0x1f5   : > { %2634 = vmatmul.mubr.bf16.gmra.mrb[16].mxu0 %v3290_v11  ;;  %v1520_v36 = vrot.slane %v1518_v30, 1  ;;  %v1528_v10 = vor.u32 %v1527_v47, %v1523_v41  ;;  %v1746_v14 = vshll.u32 %v3255_v1, 16  ;;  %v3245_v19 = vcombine.low %v1400_v12, %v4546_v52  ;;  %v1403_v37 = vld [vmem:[#allocation2 + $0x20] sm:$0xe]  ;;  %v4768_v30 = vld [vmem:[#allocation2 + $0x48] sm:$0xf] }
 0x1f6   : > { %2641 = vmatprep.mubr.bf16.mxu0 %v3300_v43  ;;  %v3289_v49 = vcombine.low %v1507_v26, %v1514_v34  ;;  %v1753_v15 = vshll.u32 %v3256_v55, 16  ;;  %v3299_v50 = vcombine.low %v1559_v56, %v1560_v6  ;;  %v3277_v29 = vcombine.low %v1735_v57, %v1742_v59  ;;  %v1402_v25 = vld [vmem:[#allocation2 + $0x18] sm:$0xe]  ;;  %v4775_v24 = vld [vmem:[#allocation2 + $0x40] sm:$0xf] }
 0x1f7   : > { %v1521_v2 = vor.u32 %v1520_v36, %v1516_v13  ;;  %v3257_v61 = vcombine.low %v4755_v20, %v4757_v27  ;;  %v1682_v11 = vrot.slane %v3246_v8, 1  ;;  %v1748_v31 = vrot.slane %v1746_v14, 1  ;;  %v4772_v36 = vld [vmem:[#allocation2 + $0x4c] sm:$0x1]  ;;  %v1405_v12 = vld [vmem:[#allocation2 + $0x30] sm:$0xe] }
 0x1f8   : > { %2568 = vmatprep.mubr.bf16.mxu1 %v3289_v49  ;;  %v1755_v21 = vrot.slane %v1753_v15, 1  ;;  %v1751_v32 = vshrl.u32 %v3256_v55, 16  ;;  %v3258_v43 = vcombine.low %v4760_v18, %v4762_v48  ;;  %v1681_v52 = vrot.slane %v3245_v19, 1  ;;  %v4777_v55 = vld [vmem:[#allocation2 + $0x44] sm:$0x1] }
 0x1f9   : > { %2569 = vmatmul.mubr.bf16.gmra.mrb[8].mxu1 %v3288_v54  ;;  %v3298_v26 = vcombine.low %v1521_v2, %v1528_v10  ;;  %v3297_v40 = vcombine.low %v4732_v53, %v4724_v3  ;;  %v1744_v34 = vshrl.u32 %v3255_v1, 16  ;;  %v1760_v35 = vshll.u32 %v3257_v61, 16  ;;  %v3910_v53 = vld [vmem:[%s4878_s3 + $0x208] sm:$0xff]   ;;  %v1397_v2 = vld [vmem:[#allocation2 + $0x34] sm:$0x1] }
 0x1fa   : > { %v1756_v13 = vor.u32 %v1755_v21, %v1751_v32  ;;  %v3275_v41 = vcombine.low %v1681_v52, %v1682_v11  ;;  %v3248_v47 = vcombine.low %v1403_v37, %v4572_v0  ;;  %v1767_v56 = vshll.u32 %v3258_v43, 16  ;;  %v1396_v15 = vld [vmem:[#allocation2 + $0x2c] sm:$0x1] }
 0x1fb   : > { %2576 = vmatprep.mubr.bf16.mxu1 %v3298_v26  ;;  %v1749_v49 = vor.u32 %v1748_v31, %v1744_v34  ;;  %v3276_v3 = vcombine.low %v4694_v44, %v4709_v45  ;;  %v3247_v1 = vcombine.low %v1402_v25, %v4567_v23  ;;  %v3260_v0 = vcombine.low %v4768_v30, %v4772_v36  ;;  %v3914_v26 = vld [vmem:[%s4878_s3 + $0x210] sm:$0xff]   ;;  %v3917_v31 = vld [vmem:[%s4878_s3 + $0x218] sm:$0xff]   ;;  %v3921_v25 = vld [vmem:[%s4878_s3 + $0x220] sm:$0xff]  }
 0x1fc   : > { %v1762_v58 = vrot.slane %v1760_v35, 1  ;;  %v3259_v54 = vcombine.low %v4775_v24, %v4777_v55  ;;  %v1684_v10 = vrot.slane %v3248_v47, 1  ;;  %v1758_v44 = vshrl.u32 %v3257_v61, 16 }
 0x1fd   : > { %2642 = vmatmul.mubr.bf16.gmra.mrb[20].mxu0 %v3299_v50  ;;  %v3286_v57 = vcombine.low %v1749_v49, %v1756_v13  ;;  %v1769_v45 = vrot.slane %v1767_v56, 1  ;;  %v1683_v23 = vrot.slane %v3247_v1, 1  ;;  %v1781_v6 = vshll.u32 %v3260_v0, 16  ;;  %v1404_v50 = vld [vmem:[#allocation2 + $0x28] sm:$0xe] }
 0x1fe   : > { %2747 = vmatprep.mubr.bf16.mxu0 %v3277_v29  ;;  %v4791_v8 = vcombine.low %v4721_v42, %v1397_v2  ;;  %v1763_v59 = vor.u32 %v1762_v58, %v1758_v44  ;;  %v1765_v14 = vshrl.u32 %v3258_v43, 16  ;;  %v1774_v19 = vshll.u32 %v3259_v54, 16  ;;  %v1399_v43 = vld [vmem:[#allocation2 + $0x44] sm:$0x1]  ;;  %v1406_v49 = vld [vmem:[#allocation2 + $0x38] sm:$0xe] }
 0x1ff   : > { %v3284_v29 = vcombine.low %v1683_v23, %v1684_v10  ;;  %v3250_v21 = vcombine.low %v1405_v12, %v1397_v2  ;;  %v3241_v61 = vcombine.low %v4719_v60, %v1396_v15  ;;  %v3285_v42 = vcombine.low %v4726_v4, %v4741_v38  ;;  %v1407_v38 = vld [vmem:[#allocation2 + $0x40] sm:$0xe]  ;;  %v1425_v56 = vld [vmem:[#allocation2 + $0x10] sm:$0xe]  ;;  %v3926_v58 = vld [vmem:[%s4878_s3 + $0x228] sm:$0xff]  }
 0x200   : > { %v1770_v11 = vor.u32 %v1769_v45, %v1765_v14  ;;  %v3249_v32 = vcombine.low %v1404_v50, %v1396_v15  ;;  %v1779_v37 = vshrl.u32 %v3260_v0, 16  ;;  %v1639_v60 = vshll.u32 %v4791_v8, 16  ;;  %v1429_v12 = vld [vmem:[#allocation2 + $0x30] sm:$0xe]  ;;  %v1428_v23 = vld [vmem:[#allocation2 + $0x28] sm:$0xe] }
 0x201   : > { %2577 = vmatmul.mubr.bf16.gmra.mrb[12].mxu1 %v3297_v40  ;;  %v1776_v62 = vrot.slane %v1774_v19, 1  ;;  %v1632_v52 = vshll.u32 %v3241_v61, 16  ;;  %v1772_v4 = vshrl.u32 %v3259_v54, 16  ;;  %v1398_v40 = vld [vmem:[#allocation2 + $0x3c] sm:$0x1]  ;;  %v4808_v13 = vcombine.low %v4735_v17, %v1399_v43  ;;  %v3930_v15 = vld [vmem:[%s4878_s3 + $0x230] sm:$0xff]  }
 0x202   : > { %2682 = vmatprep.mubr.bf16.mxu1 %v3275_v41  ;;  %v3295_v51 = vcombine.low %v1763_v59, %v1770_v11  ;;  %v1685_v34 = vrot.slane %v3249_v32, 1  ;;  %v1641_v47 = vrot.slane %v1639_v60, 1  ;;  %v3252_v1 = vcombine.low %v1407_v38, %v1399_v43  ;;  %v1430_v59 = vld [vmem:[#allocation2 + $0x38] sm:$0xe]  ;;  %v1427_v19 = vld [vmem:[#allocation2 + $0x20] sm:$0xe] }
 0x203   : > { %v1777_v35 = vor.u32 %v1776_v62, %v1772_v4  ;;  %v4814_v0 = vcombine.low %v4737_v63, %v1398_v40  ;;  %v1634_v17 = vrot.slane %v1632_v52, 1  ;;  %v3251_v54 = vcombine.low %v1406_v49, %v1398_v40  ;;  %v1426_v63 = vld [vmem:[#allocation2 + $0x18] sm:$0xe] }
 0x204   : > { %v3261_v2 = vcombine.low %v1425_v56, %v4696_v33  ;;  %v1653_v7 = vshll.u32 %v4808_v13, 16  ;;  %v1688_v44 = vrot.slane %v3252_v1, 1  ;;  %v3265_v50 = vcombine.low %v1429_v12, %v4757_v27 }
 0x205   : > { %2748 = vmatmul.mubr.bf16.vlgmr.msra.gmra.mrb[24].mxu0 %v3276_v3  ;;  %v1646_v45 = vshll.u32 %v4814_v0, 16  ;;  %v1687_v33 = vrot.slane %v3251_v54, 1  ;;  %v3303_v11 = vcombine.low %v4775_v24, %v4768_v30  ;;  %v3266_v27 = vcombine.low %v1430_v59, %v4762_v48 }
 0x206   : > { %2755 = vmatprep.mubr.bf16.mxu0 %v3286_v57  ;;  %3644 = vmatpush3.bf16.msra.mxu0 %v4667_v39  ;;  %v3294_v57 = vcombine.low %v4755_v20, %v4760_v18  ;;  %v3262_v18 = vcombine.low %v1426_v63, %v4711_v46  ;;  %v1644_v32 = vshrl.u32 %v4814_v0, 16  ;;  %v3263_v60 = vcombine.low %v1427_v19, %v4728_v9 }
 0x207   : > { %3645 = vmatprep.subr.bf16.mxu0 %v3910_v53  ;;  %v3302_v14 = vcombine.low %v1687_v33, %v1688_v44  ;;  %v1813_v62 = vrot.slane %v3265_v50, 1 }
 0x208   : > { %v1810_v46 = vrot.slane %v3262_v18, 1  ;;  %v1811_v52 = vrot.slane %v3263_v60, 1 }
 0x209   : > { %2683 = vmatmul.mubr.bf16.vlgmr.msra.gmra.mrb[16].mxu1 %v3274_v5  ;;  %v1783_v5 = vrot.slane %v1781_v6, 1 }
 0x20a   : > { %3646 = vmatpush3.bf16.msra.mxu0 %v3910_v53  ;;  %3685 = vmatpush3.bf16.msra.mxu1 %v4667_v39  ;;  %v1686_v39 = vrot.slane %v3250_v21, 1  ;;  %v1651_v21 = vshrl.u32 %v4808_v13, 16 }
 0x20b   : > { %2690 = vmatprep.mubr.bf16.mxu1 %v3284_v29  ;;  %3678 = vmatprep.subr.bf16.mxu1 %v3910_v53  ;;  %v1784_v41 = vor.u32 %v1783_v5, %v1779_v37  ;;  %v1648_v29 = vrot.slane %v1646_v45, 1  ;;  %v1814_v5 = vrot.slane %v3266_v27, 1 }
 0x20c   : > { %3647 = vmatprep.subr.bf16.mxu0 %v3914_v26  ;;  %v3293_v3 = vcombine.low %v1685_v34, %v1686_v39 }
 0x20d   : > { %2756 = vmatmul.mubr.bf16.gmra.mrb[28].mxu0 %v3285_v42  ;;  %v3304_v22 = vcombine.low %v1777_v35, %v1784_v41  ;;  %v3933_v42 = vld [vmem:[%s4878_s3 + $0x238] sm:$0xff]   ;;  %v1649_v30 = vor.u32 %v1648_v29, %v1644_v32  ;;  %v3296_v9 = vcombine.low %v1813_v62, %v1814_v5  ;;  %v3939_v41 = vld [vmem:[%s4011_s30 + $0x108] ss:$8 sps:$4 sm:$0xff]  }
 0x20e   : > { %2763 = vmatprep.mubr.bf16.mxu0 %v3295_v51  ;;  %3648 = vmatpush3.bf16.msra.mxu0 %v3914_v26  ;;  %v1432_v51 = vld [vmem:[#allocation2 + $0x48] sm:$0xe]  ;;  %v3938_v35 = vld [vmem:[%s4011_s30 + $0xf8] ss:$8 sps:$4 sm:$0xff]  }
 0x20f   : > { %3686 = vmatpush3.bf16.msra.mxu1 %v3910_v53  ;;  %3649 = vmatprep.subr.bf16.mxu0 %v3917_v31  ;;  %v1637_v53 = vshrl.u32 %v4791_v8, 16  ;;  %v1809_v8 = vrot.slane %v3261_v2, 1  ;;  %v3268_v43 = vcombine.low %v1432_v51, %v4772_v36  ;;  %v2853_v36 = vld [vmem:[%s4880_s5] sm:$0x3] }
 0x210   : > { %3679 = vmatprep.subr.bf16.mxu1 %v3914_v26  ;;  %v2894_v13 = vsel %vm1070_vm0, %v2853_v36, 0 }
 0x211   : > { %2691 = vmatmul.mubr.bf16.gmra.mrb[20].mxu1 %v3283_v28  ;;  %v1630_v28 = vshrl.u32 %v3241_v61, 16  ;;  %v1642_v10 = vor.u32 %v1641_v47, %v1637_v53  ;;  %v3264_v61 = vcombine.low %v1428_v23, %v4743_v16  ;;  %v1431_v16 = vld [vmem:[#allocation2 + $0x40] sm:$0xe]  ;;  %v1816_v40 = vrot.slane %v3268_v43, 1  ;;  %v3269_v53 = vld [vmem:[%s4879_s4] ss:$0 sm:$0xff] }
 0x212   : > { %3650 = vmatpush3.bf16.msra.mxu0 %v3917_v31  ;;  %2698 = vmatprep.mubr.bf16.mxu1 %v3293_v3  ;;  %v3267_v48 = vcombine.low %v1431_v16, %v4777_v55  ;;  %v3936_v55 = vld [vmem:[%s4011_s30 + $0xd8] ss:$8 sps:$4 sm:$0xff]  }
 0x213   : > { %3687 = vmatpush3.bf16.msra.mxu1 %v3914_v26  ;;  %3651 = vmatprep.subr.bf16.mxu0 %v3921_v25  ;;  %v1635_v20 = vor.u32 %v1634_v17, %v1630_v28  ;;  %v1655_v26 = vrot.slane %v1653_v7, 1  ;;  %v1812_v24 = vrot.slane %v3264_v61, 1 }
 0x214   : > { %3680 = vmatprep.subr.bf16.mxu1 %v3917_v31  ;;  %v1815_v38 = vrot.slane %v3267_v48, 1 }
 0x215   : > { %2764 = vmatmul.mubr.bf16.gmra.mrb[32].mxu0 %v3294_v57  ;;  %v3292_v6 = vcombine.low %v1635_v20, %v1642_v10  ;;  %v1656_v37 = vor.u32 %v1655_v26, %v1651_v21  ;;  %v3287_v4 = vcombine.low %v1811_v52, %v1812_v24 }
 0x216   : > { %2771 = vmatprep.mubr.bf16.mxu0 %v3304_v22  ;;  %3652 = vmatpush3.bf16.msra.mxu0 %v3921_v25  ;;  %v3305_v34 = vcombine.low %v1815_v38, %v1816_v40 }
 0x217   : > { %3688 = vmatpush3.bf16.msra.mxu1 %v3917_v31  ;;  %3653 = vmatprep.subr.bf16.mxu0 %v3926_v58  ;;  %v3278_v31 = vcombine.low %v1809_v8, %v1810_v46  ;;  %v3301_v39 = vcombine.low %v1649_v30, %v1656_v37 }
 0x218   : > { %3681 = vmatprep.subr.bf16.mxu1 %v3921_v25 }
 0x219   : > { %2699 = vmatmul.mubr.bf16.gmra.mrb[24].mxu1 %v3292_v6 }
 0x21a   : > { %3654 = vmatpush3.bf16.msra.mxu0 %v3926_v58  ;;  %2706 = vmatprep.mubr.bf16.mxu1 %v3302_v14 }
 0x21b   : > { %3689 = vmatpush3.bf16.msra.mxu1 %v3921_v25  ;;  %3655 = vmatprep.subr.bf16.mxu0 %v3930_v15  ;;  %v3937_v25 = vld [vmem:[%s4011_s30 + $0xe8] ss:$8 sps:$4 sm:$0xff]  }
 0x21c   : > { %3682 = vmatprep.subr.bf16.mxu1 %v3926_v58 }
 0x21d   : > { %2772 = vmatmul.mubr.bf16.gmra.mrb[36].mxu0 %v3303_v11 }
 0x21e   : > { %3656 = vmatpush3.bf16.msra.mxu0 %v3930_v15  ;;  %3659 = vmatprep.mubr.bf16.mxu0 %v3278_v31 }
 0x21f   : > { %3690 = vmatpush3.bf16.msra.mxu1 %v3926_v58  ;;  %3657 = vmatprep.subr.bf16.mxu0 %v3933_v42 }
 0x220   : > { %3683 = vmatprep.subr.bf16.mxu1 %v3930_v15 }
 0x221   : > { %2707 = vmatmul.mubr.bf16.gmra.mrb[28].mxu1 %v3301_v39 }
 0x222   : > { %3658 = vmatpush3.bf16.msra.mxu0 %v3933_v42  ;;  %3663 = vmatprep.mubr.bf16.mxu1 %v3296_v9 }
 0x223   : > { %3691 = vmatpush3.bf16.msra.mxu1 %v3930_v15 }
 0x224   : > { %3684 = vmatprep.subr.bf16.mxu1 %v3933_v42 }
 0x225   : > { %3660 = vmatmul.mubr.bf16.vlgmr.msra.gmra.mrb[40].mxu0 %v3287_v4 }
 0x227   : > { %3692 = vmatpush3.bf16.msra.mxu1 %v3933_v42 }
 0x228   : > { %3718 = vmatprep.subr.msk.bf16.mxu1 %vm1070_vm0, %v2853_v36 }
 0x22a   : > { %3664 = vmatmul.mubr.bf16.vlgmr.msra.gmra.mrb[32].mxu1 %v3305_v34 }
 0x22b   : > { %3668 = vmatpush3.bf16.msra.mxu1 %v2894_v13  ;;  %3669 = vmatprep.mubr.msk.bf16.mxu1 %vm866_vm1, %v3936_v55 }
 0x232   : > { %3670 = vmatmul.mubr.msk.bf16.vlgmr.msra.gmra.mrb[36].mxu1 %vm866_vm1, %v3937_v25 }
 0x233   : > { %3673 = vmatprep.mubr.msk.bf16.mxu1 %vm866_vm1, %v3938_v35 }
 0x23a   : > { %3674 = vmatmul.mubr.msk.bf16.gmra.mrb[32].mxu1 %vm866_vm1, %v3939_v41 }
 0x288   : > { %v3508_v47 = vpop.f32.mrb[8].mxu0 }
 0x289   : > { %v3509_v49 = vpop.f32.mrb[9].mxu0 }
 0x28a   : > { %v3510_v56 = vadd.f32 %v3509_v49, %v3508_v47  ;;  %v3511_v3 = vpop.f32.mrb[10].mxu0 }
 0x28b   : > { %v3512_v1 = vpop.f32.mrb[11].mxu0 }
 0x28c   : > { %v3513_v0 = vadd.f32 %v3512_v1, %v3511_v3 }
 0x28e   : > { %v3468_v17 = vpop.f32.mrb[0].mxu1 }
 0x28f   : > { %v3469_v57 = vpop.f32.mrb[1].mxu1 }
 0x290   : > { %v3514_v58 = vpop.f32.mrb[12].mxu0  ;;  %v3470_v54 = vadd.f32 %v3469_v57, %v3468_v17  ;;  %v3471_v63 = vpop.f32.mrb[2].mxu1 }
 0x291   : > { %v3515_v2 = vpop.f32.mrb[13].mxu0  ;;  %v3472_v7 = vpop.f32.mrb[3].mxu1 }
 0x292   : > { %v3516_v22 = vadd.f32 %v3515_v2, %v3514_v58  ;;  %v3517_v28 = vpop.f32.mrb[14].mxu0  ;;  %v2555_v10 = vadd.f32 %v3470_v54, %v3269_v53  ;;  %v3473_v44 = vadd.f32 %v3472_v7, %v3471_v63 }
 0x293   : > { %v3518_v45 = vpop.f32.mrb[15].mxu0 }
 0x294   : > { %v3519_v20 = vadd.f32 %v3518_v45, %v3517_v28  ;;  %v2558_v18 = vadd.f32 %v3473_v44, %v3269_v53  ;;  %v2620_v12 = vadd.f32 %v3510_v56, %v2555_v10 }
 0x296   : > { %v3474_v33 = vpop.f32.mrb[4].mxu1  ;;  %v2623_v15 = vadd.f32 %v3513_v0, %v2558_v18 }
 0x297   : > { %v3475_v23 = vpop.f32.mrb[5].mxu1 }
 0x298   : > { %v3476_v6 = vadd.f32 %v3475_v23, %v3474_v33  ;;  %v3477_v8 = vpop.f32.mrb[6].mxu1 }
 0x299   : > { %v3478_v26 = vpop.f32.mrb[7].mxu1 }
 0x29a   : > { %v2563_v59 = vadd.f32 %v3476_v6, %v3269_v53  ;;  %v3479_v14 = vadd.f32 %v3478_v26, %v3477_v8 }
 0x29c   : > { %v2566_v50 = vadd.f32 %v3479_v14, %v3269_v53  ;;  %v2628_v19 = vadd.f32 %v3516_v22, %v2563_v59 }
 0x29e   : > { %v4861_v46 = vadd.f32 %v3519_v20, %v2566_v50 }
 0x2c8   : > { %v3520_v29 = vpop.f32.mrb[16].mxu0 }
 0x2c9   : > { %v3521_v21 = vpop.f32.mrb[17].mxu0 }
 0x2ca   : > { %v3522_v61 = vadd.f32 %v3521_v21, %v3520_v29  ;;  %v3523_v11 = vpop.f32.mrb[18].mxu0 }
 0x2cb   : > { %v3524_v42 = vpop.f32.mrb[19].mxu0 }
 0x2cc   : > { %v3525_v27 = vadd.f32 %v3524_v42, %v3523_v11  ;;  %v3480_v31 = vpop.f32.mrb[8].mxu1 }
 0x2cd   : > { %v3481_v32 = vpop.f32.mrb[9].mxu1 }
 0x2ce   : > { %v3482_v37 = vadd.f32 %v3481_v32, %v3480_v31  ;;  %v3483_v60 = vpop.f32.mrb[10].mxu1 }
 0x2cf   : > { %v3484_v16 = vpop.f32.mrb[11].mxu1 }
 0x2d0   : > { %v3526_v51 = vpop.f32.mrb[20].mxu0  ;;  %v2571_v62 = vadd.f32 %v3482_v37, %v3269_v53  ;;  %v3485_v30 = vadd.f32 %v3484_v16, %v3483_v60 }
 0x2d1   : > { %v3527_v24 = vpop.f32.mrb[21].mxu0 }
 0x2d2   : > { %v3528_v5 = vadd.f32 %v3527_v24, %v3526_v51  ;;  %v3529_v48 = vpop.f32.mrb[22].mxu0  ;;  %v2574_v43 = vadd.f32 %v3485_v30, %v3269_v53  ;;  %v2636_v52 = vadd.f32 %v3522_v61, %v2571_v62 }
 0x2d3   : > { %v3530_v39 = vpop.f32.mrb[23].mxu0 }
 0x2d4   : > { %v3531_v9 = vadd.f32 %v3530_v39, %v3529_v48  ;;  %v3486_v4 = vpop.f32.mrb[12].mxu1  ;;  %v2639_v38 = vadd.f32 %v3525_v27, %v2574_v43 }
 0x2d5   : > { %v3487_v40 = vpop.f32.mrb[13].mxu1 }
 0x2d6   : > { %v3488_v36 = vadd.f32 %v3487_v40, %v3486_v4  ;;  %v3489_v55 = vpop.f32.mrb[14].mxu1 }
 0x2d7   : > { %v3490_v34 = vpop.f32.mrb[15].mxu1 }
 0x2d8   : > { %v3588_v13 = vpop.f32.mrb[24].mxu0  ;;  %v2579_v25 = vadd.f32 %v3488_v36, %v3269_v53  ;;  %v3491_v35 = vadd.f32 %v3490_v34, %v3489_v55 }
 0x2d9   : > { %v3589_v41 = vpop.f32.mrb[25].mxu0 }
 0x2da   : > { %v3590_v47 = vadd.f32 %v3589_v41, %v3588_v13  ;;  %v3591_v49 = vpop.f32.mrb[26].mxu0  ;;  %v2582_v56 = vadd.f32 %v3491_v35, %v3269_v53  ;;  %v2644_v1 = vadd.f32 %v3528_v5, %v2579_v25 }
 0x2db   : > { %v3592_v3 = vpop.f32.mrb[27].mxu0 }
 0x2dc   : > { %v3593_v0 = vadd.f32 %v3592_v3, %v3591_v49  ;;  %v3548_v17 = vpop.f32.mrb[16].mxu1  ;;  %v2647_v57 = vadd.f32 %v3531_v9, %v2582_v56 }
 0x2dd   : > { %v3549_v58 = vpop.f32.mrb[17].mxu1 }
 0x2de   : > { %v3550_v54 = vadd.f32 %v3549_v58, %v3548_v17  ;;  %v3551_v63 = vpop.f32.mrb[18].mxu1 }
 0x2df   : > { %v3552_v2 = vpop.f32.mrb[19].mxu1 }
 0x2e0   : > { %v3594_v7 = vpop.f32.mrb[28].mxu0  ;;  %v2685_v22 = vadd.f32 %v3550_v54, %v2620_v12  ;;  %v3553_v28 = vadd.f32 %v3552_v2, %v3551_v63 }
 0x2e1   : > { %v3595_v10 = vpop.f32.mrb[29].mxu0 }
 0x2e2   : > { %v3596_v44 = vadd.f32 %v3595_v10, %v3594_v7  ;;  %v3597_v45 = vpop.f32.mrb[30].mxu0  ;;  %v2688_v20 = vadd.f32 %v3553_v28, %v2623_v15  ;;  %v2750_v33 = vadd.f32 %v3590_v47, %v2685_v22  ;;  %v3386_v7 = vld [vmem:[%s4881_s6] ss:$0 sm:$0xff] }
 0x2e3   : > { %v3598_v18 = vpop.f32.mrb[31].mxu0 }
 0x2e4   : > { %v3599_v23 = vadd.f32 %v3598_v18, %v3597_v45  ;;  %v3554_v53 = vpop.f32.mrb[20].mxu1  ;;  %v2753_v6 = vadd.f32 %v3593_v0, %v2688_v20 }
 0x2e5   : > { %v3555_v8 = vpop.f32.mrb[21].mxu1 }
 0x2e6   : > { %v3556_v26 = vadd.f32 %v3555_v8, %v3554_v53  ;;  %v3557_v59 = vpop.f32.mrb[22].mxu1 }
 0x2e7   : > { %v3558_v14 = vpop.f32.mrb[23].mxu1 }
 0x2e8   : > { %v3600_v50 = vpop.f32.mrb[32].mxu0  ;;  %v2693_v29 = vadd.f32 %v3556_v26, %v2628_v19  ;;  %v3559_v21 = vadd.f32 %v3558_v14, %v3557_v59 }
 0x2e9   : > { %v3601_v61 = vpop.f32.mrb[33].mxu0 }
 0x2ea   : > { %v3602_v11 = vadd.f32 %v3601_v61, %v3600_v50  ;;  %v3603_v12 = vpop.f32.mrb[34].mxu0  ;;  %v2696_v42 = vadd.f32 %v3559_v21, %v4861_v46  ;;  %v2758_v31 = vadd.f32 %v3596_v44, %v2693_v29 }
 0x2eb   : > { %v3604_v27 = vpop.f32.mrb[35].mxu0 }
 0x2ec   : > { %v3605_v15 = vadd.f32 %v3604_v27, %v3603_v12  ;;  %v3560_v32 = vpop.f32.mrb[24].mxu1  ;;  %v2761_v37 = vadd.f32 %v3599_v23, %v2696_v42 }
 0x2ed   : > { %v3561_v60 = vpop.f32.mrb[25].mxu1 }
 0x2ee   : > { %v3562_v16 = vadd.f32 %v3561_v60, %v3560_v32  ;;  %v3563_v51 = vpop.f32.mrb[26].mxu1 }
 0x2ef   : > { %v3564_v62 = vpop.f32.mrb[27].mxu1 }
 0x2f0   : > { %v3606_v30 = vpop.f32.mrb[36].mxu0  ;;  %v2701_v24 = vadd.f32 %v3562_v16, %v2636_v52  ;;  %v3565_v5 = vadd.f32 %v3564_v62, %v3563_v51 }
 0x2f1   : > { %v3607_v48 = vpop.f32.mrb[37].mxu0 }
 0x2f2   : > { %v3608_v19 = vadd.f32 %v3607_v48, %v3606_v30  ;;  %v3609_v43 = vpop.f32.mrb[38].mxu0  ;;  %v2704_v39 = vadd.f32 %v3565_v5, %v2639_v38  ;;  %v2766_v4 = vadd.f32 %v3602_v11, %v2701_v24 }
 0x2f3   : > { %v3610_v9 = vpop.f32.mrb[39].mxu0 }
 0x2f4   : > { %v3611_v40 = vadd.f32 %v3610_v9, %v3609_v43  ;;  %v3566_v46 = vpop.f32.mrb[28].mxu1  ;;  %v2769_v36 = vadd.f32 %v3605_v15, %v2704_v39  ;;  %v3707_v21 = vadd.f32 %v3386_v7, %v2766_v4 }
 0x2f5   : > { %v3567_v55 = vpop.f32.mrb[29].mxu1 }
 0x2f6   : > { %v3568_v34 = vadd.f32 %v3567_v55, %v3566_v46  ;;  %v3569_v13 = vpop.f32.mrb[30].mxu1 }
 0x2f7   : > { %v3570_v25 = vpop.f32.mrb[31].mxu1 }
 0x2f8   : > { %v3661_v35 = vpop.f32.mrb[40].mxu0  ;;  %v2709_v41 = vadd.f32 %v3568_v34, %v2644_v1  ;;  %v3571_v47 = vadd.f32 %v3570_v25, %v3569_v13 }
 0x2f9   : > { %v2823_v52 = vadd.f32 %v3661_v35, %v2758_v31  ;;  %v2814_v49 = vpop.f32.mrb[41].mxu0  ;;  %v3711_v31 = vadd.f32 %v3386_v7, %v2769_v36 }
 0x2fa   : > { %v2815_v56 = vadd.f32 %v2814_v49, %v2750_v33  ;;  %v3662_v3 = vpop.f32.mrb[42].mxu0  ;;  %v2712_v0 = vadd.f32 %v3571_v47, %v2647_v57  ;;  %v2774_v58 = vadd.f32 %v3608_v19, %v2709_v41 }
 0x2fb   : > { %v2826_v38 = vadd.f32 %v3662_v3, %v2761_v37  ;;  %v2817_v17 = vpop.f32.mrb[43].mxu0 }
 0x2fc   : > { %v2818_v54 = vadd.f32 %v2817_v17, %v2753_v6  ;;  %v2777_v63 = vadd.f32 %v3611_v40, %v2712_v0  ;;  %v3705_v14 = vadd.f32 %v3386_v7, %v2774_v58 }
 0x2fd   : > { %v3700_v28 = vadd.f32 %v3386_v7, %v2826_v38 }
 0x2fe   : > { %v3703_v45 = vadd.f32 %v3386_v7, %v2818_v54  ;;  %v3709_v12 = vadd.f32 %v3386_v7, %v2777_v63 }
 0x305   : > { %v3671_v2 = vpop.f32.mrb[36].mxu1 }
 0x306   : > { %v3694_v22 = vadd.f32 %v3671_v2, %v2823_v52  ;;  %v2930_v1 = vpop.f32.mrb[37].mxu1 }
 0x307   : > { %v3697_v10 = vadd.f32 %v2930_v1, %v2815_v56  ;;  %v3672_v44 = vpop.f32.mrb[38].mxu1 }
 0x308   : > { %v3695_v20 = vadd.f32 %v3694_v22, %v3386_v7  ;;  %v3701_v57 = vadd.f32 %v3700_v28, %v3672_v44  ;;  %v2933_v18 = vpop.f32.mrb[39].mxu1 }
 0x309   : > { %v3698_v33 = vadd.f32 %v3697_v10, %v3386_v7  ;;  %v3704_v23 = vadd.f32 %v3703_v45, %v2933_v18 }
 0x30a   : > { %v2971_v53 = vmax.f32 %v3695_v20, 0.0  ;;  %v2972_v6 = vmax.f32 %v3701_v57, 0.0 }
 0x30b   : > { %v2969_v8 = vmax.f32 %v3698_v33, 0.0  ;;  %v2970_v26 = vmax.f32 %v3704_v23, 0.0 }
 0x30c   : > { %v3430_v59 = vpack.c.bf16 %v2972_v6, %v2971_v53 }
 0x30d   : > { %v3425_v50 = vpack.c.bf16 %v2970_v26, %v2969_v8  ;;  %v3675_v29 = vpop.f32.mrb[32].mxu1 }
 0x30e   : > { %3442 = vst [vmem:[%s283_s16 + $0x8] sm:$0xff] %v3430_v59   ;;  %v3706_v61 = vadd.f32 %v3705_v14, %v3675_v29  ;;  %v2946_v11 = vpop.f32.mrb[33].mxu1 }
 0x30f   : > { %3426 = vst [vmem:[%s283_s16] sm:$0xff] %v3425_v50   ;;  %v3708_v42 = vadd.f32 %v3707_v21, %v2946_v11  ;;  %v3676_v27 = vpop.f32.mrb[34].mxu1 }
 0x310   : > { %v3710_v15 = vadd.f32 %v3709_v12, %v3676_v27  ;;  %v2949_v32 = vpop.f32.mrb[35].mxu1  ;;  %v2975_v60 = vmax.f32 %v3706_v61, 0.0 }
 0x311   : > { %v3712_v37 = vadd.f32 %v3711_v31, %v2949_v32  ;;  %v2973_v51 = vmax.f32 %v3708_v42, 0.0 }
 0x312   : > { %v2976_v16 = vmax.f32 %v3710_v15, 0.0 }
 0x313   : > { %v2974_v62 = vmax.f32 %v3712_v37, 0.0 }
 0x314   : > { %v3440_v30 = vpack.c.bf16 %v2976_v16, %v2975_v60 }
 0x315   : > { %v3435_v24 = vpack.c.bf16 %v2974_v62, %v2973_v51 }
 0x316   : > { %3444 = vst [vmem:[%s283_s16 + $0x18] sm:$0xff] %v3440_v30  }
 0x317   : > { %3443 = vst [vmem:[%s283_s16 + $0x10] sm:$0xff] %v3435_v24  }
 0x318 PF: > { %s17_s24 = sadd.s32 1, %s3946_s24  }
 0x319   : > { %p14_p5 = scmp.ge.s32.totalorder %s17_s24, 4  }
 0x31b   :  { %16 = sbr.rel (!%p14_p5) target bundleno = 1 (0x1), region = 86 }

</bundles_post_ra>
